<compile_context>
chip_gen: v5e
topology: v5e:2x2
jax: 0.10.0
libtpu: 0.0.40
codegen_flags: <defaults>
</compile_context>

<pallas_src>
import numpy as np
import jax
import jax.numpy as jnp
from jax.experimental import pallas as pl
from jax.experimental.pallas import tpu as pltpu

# ----------------------------- problem sizes --------------------------------
B, C_IN, H, W = 2, 4, 5, 5          # input: (2, 4, 5, 5) NCHW
HIDDEN = 32                          # hidden_dim
C1 = 64                              # layer1 / layer2 channels
C2 = 64
N_CLASSES = 5
H1, W1 = H // 2, W // 2              # after pool1 -> 2 x 2
H2, W2 = H1 // 2, W1 // 2            # after pool2 -> 1 x 1
N0 = B * H * W                       # 50 rows into layer1
N1 = B * H1 * W1                     # 8 rows into layer2
N2 = B * H2 * W2                     # 2 rows into fc1 (== batch, 64 feats)
EPS = 1e-5
LANES = 128                          # fc lane padding / output lane width
assert C2 * H2 * W2 == 64 * (5 // 4) * (5 // 4)   # fc1 in_features check
# The (b*h*w, c) row layout only matches PyTorch's x.view(b, -1) flatten
# because H2*W2 == 1 after pool2.
assert H2 * W2 == 1

TAPS = tuple((dh, dw) for dh in (-1, 0, 1) for dw in (-1, 0, 1))   # kh*3+kw order

# vec-table row indices (must match prep_inputs() packing order)
VEC_B1, VEC_G1, VEC_BE1 = 0, 1, 2
VEC_B2, VEC_G2, VEC_BE2 = 3, 4, 5
VEC_FB1, VEC_G3, VEC_BE3, VEC_FB2 = 6, 7, 8, 9


def pool_keep_rows(b, h, w):
    """Row indices (in (b, h, w) flattening) kept by a 2x2/stride-2 floor pool."""
    rows = []
    for bi in range(b):
        for hi in range(0, (h // 2) * 2, 2):
            for wi in range(0, (w // 2) * 2, 2):
                rows.append(bi * h * w + hi * w + wi)
    return tuple(rows)


POOL1_ROWS = pool_keep_rows(B, H, W)     # 8 of the 50 layer1 rows
POOL2_ROWS = pool_keep_rows(B, H1, W1)   # 2 of the 8 layer2 rows


# ------------------------------ Pallas kernel -------------------------------
def relation_kernel(x_ref, mask_ref, vec_ref, w64_ref, w128_ref, out_ref):
    f32 = jnp.float32
    bf16 = jnp.bfloat16

    def vrow(r, width):
        # static slice of the packed (10, 128) parameter table
        return vec_ref[r:r + 1, 0:width]                         # (1, width) f32

    def batchnorm(z, g, be):
        # Training-mode BN, single fused reduction pass:
        #   sum over concat([z, z*z], lanes) gives E[z] and E[z^2] together.
        # var = E[z^2] - E[z]^2 (biased).  Fine at these scales/tolerances;
        # fragile only if |mean| >> std, which these weight scales avoid.
        n, c = z.shape
        both = jnp.sum(jnp.concatenate([z, z * z], axis=1), axis=0, keepdims=True)
        m = both[:, :c] * (1.0 / n)
        v = both[:, c:] * (1.0 / n) - m * m
        inv = jax.lax.rsqrt(v + EPS) * g
        return z * inv + (be - m * inv)

    def maxpool(z, wdim, keep_rows):
        # 2x2 / stride-2 max pool: two shifted whole-array maxima (static
        # sublane shifts of a zero-padded copy) + selection of even-(h,w)
        # rows.  Padded / cross-boundary rows are never among the kept rows.
        n, c = z.shape
        zp = jnp.concatenate([z, jnp.zeros((wdim + 1, c), f32)], axis=0)
        m = jnp.maximum(zp[0:n + wdim, :], zp[1:n + wdim + 1, :])     # w-pairs
        m = jnp.maximum(m[0:n, :], m[wdim:n + wdim, :])               # h-pairs
        return jnp.concatenate([m[r:r + 1, :] for r in keep_rows], axis=0)

    def shifted_taps(z, mask, n, cin, wdim):
        # The 9 taps of a 3x3/pad=1 conv on (b,h,w)-flattened rows: tap
        # (dh, dw) of row r is row r + dh*wdim + dw of a zero-padded copy;
        # host-precomputed 0/1 masks zero out-of-image rows (1 VPU mul/tap).
        pad = wdim + 1
        zp = jnp.zeros((pad, cin), f32)
        xp = jnp.concatenate([zp, z, zp], axis=0)                 # (n + 2*pad, cin)
        taps = []
        for t, (dh, dw) in enumerate(TAPS):
            d = dh * wdim + dw
            taps.append(xp[pad + d: pad + d + n, :] * mask[:, t:t + 1])
        return taps

    # ---- layer1: Conv3x3(pad=1) -> BN2d -> ReLU -> MaxPool2x2 --------------
    x = x_ref[...]                                                # (N0, C_IN) f32
    m1 = mask_ref[N1:N1 + N0, :]                                  # (N0, 9)
    col = jnp.concatenate(shifted_taps(x, m1, N0, C_IN, W), axis=1)   # (N0, 36)
    w1 = w64_ref[9 * C1: 9 * C1 + 9 * C_IN, :]                    # (36, 64) bf16
    z = jnp.dot(col.astype(bf16), w1, preferred_element_type=f32)
    z = z + vrow(VEC_B1, C1)
    z = jnp.maximum(batchnorm(z, vrow(VEC_G1, C1), vrow(VEC_BE1, C1)), 0.0)
    z = maxpool(z, W, POOL1_ROWS)                                 # (N1, 64)

    # ---- layer2: per-tap accumulated Conv3x3 -> BN2d -> ReLU -> MaxPool -----
    m2 = mask_ref[0:N1, :]                                        # (N1, 9)
    taps = shifted_taps(z, m2, N1, C1, W1)
    acc = jnp.zeros((N1, C2), f32)
    for t in range(9):
        wt = w64_ref[t * C1:(t + 1) * C1, :]                      # (64, 64) bf16
        acc = acc + jnp.dot(taps[t].astype(bf16), wt, preferred_element_type=f32)
    z = acc + vrow(VEC_B2, C2)
    z = jnp.maximum(batchnorm(z, vrow(VEC_G2, C2), vrow(VEC_BE2, C2)), 0.0)
    z = maxpool(z, W1, POOL2_ROWS)                                # (N2, 64) == (B, 64)

    # ---- fc1: Linear -> ReLU -> BN1d  (lanes padded to 128, pads stay 0) ----
    fw1 = w128_ref[0:C2, :]                                       # (64, 128) bf16
    h = jnp.dot(z.astype(bf16), fw1, preferred_element_type=f32) + vrow(VEC_FB1, LANES)
    h = batchnorm(jnp.maximum(h, 0.0), vrow(VEC_G3, LANES), vrow(VEC_BE3, LANES))

    # ---- fc2: Linear -> Sigmoid (padded output lanes hold sigmoid(0)) -------
    fw2 = w128_ref[C2:C2 + LANES, :]                              # (128, 128) bf16
    o = jnp.dot(h.astype(bf16), fw2, preferred_element_type=f32) + vrow(VEC_FB2, LANES)
    out_ref[...] = jax.nn.sigmoid(o).astype(out_ref.dtype)        # (B, 128) lane-dense


# --------------------------- host-side glue ---------------------------------
def make_conv_masks(b, h, w):
    """(b*h*w, 9) 0/1 validity masks, one column per 3x3 tap (kh*3+kw order)."""
    n = b * h * w
    m = np.zeros((n, 9), np.float32)
    for t, (dh, dw) in enumerate(TAPS):
        for bi in range(b):
            for hi in range(h):
                for wi in range(w):
                    if 0 <= hi + dh < h and 0 <= wi + dw < w:
                        m[bi * h * w + hi * w + wi, t] = 1.0
    return jnp.asarray(m)


def init_params(key):
    ks = jax.random.split(key, 14)
    f32 = jnp.float32
    return {
        # conv weights stored per-tap: (9, Cin, Cout); biases/BN as (1, C) rows
        "w1": 0.1 * jax.random.normal(ks[0], (9, C_IN, C1), f32),
        "b1": 0.1 * jax.random.normal(ks[1], (1, C1), f32),
        "g1": 1.0 + 0.1 * jax.random.normal(ks[2], (1, C1), f32),
        "be1": 0.1 * jax.random.normal(ks[3], (1, C1), f32),
        "w2": 0.1 * jax.random.normal(ks[4], (9, C1, C2), f32),
        "b2": 0.1 * jax.random.normal(ks[5], (1, C2), f32),
        "g2": 1.0 + 0.1 * jax.random.normal(ks[6], (1, C2), f32),
        "be2": 0.1 * jax.random.normal(ks[7], (1, C2), f32),
        "fw1": 0.1 * jax.random.normal(ks[8], (C2 * H2 * W2, HIDDEN), f32),
        "fb1": 0.1 * jax.random.normal(ks[9], (1, HIDDEN), f32),
        "g3": 1.0 + 0.1 * jax.random.normal(ks[10], (1, HIDDEN), f32),
        "be3": 0.1 * jax.random.normal(ks[11], (1, HIDDEN), f32),
        "fw2": 0.1 * jax.random.normal(ks[12], (HIDDEN, N_CLASSES), f32),
        "fb2": 0.1 * jax.random.normal(ks[13], (1, N_CLASSES), f32),
    }


def prep_inputs(p):
    """Pack parameters into the kernel's 4 constant inputs (bf16 weights,
    one f32 vector table, one stacked mask table)."""
    bf16 = jnp.bfloat16

    # conv weight slab: per-tap conv2 blocks first (rows t*64, 8-aligned),
    # im2col conv1 weights after (row 576, 8-aligned)
    w2f = p["w2"].reshape(9 * C1, C2)                    # (576, 64)
    w1f = p["w1"].reshape(9 * C_IN, C1)                  # (36, 64)
    w64 = jnp.concatenate([w2f, w1f], axis=0).astype(bf16)          # (612, 64)

    hp = LANES - HIDDEN
    op = LANES - N_CLASSES
    fw1p = jnp.pad(p["fw1"], ((0, 0), (0, hp)))          # (64, 128)
    fw2p = jnp.pad(p["fw2"], ((0, hp), (0, op)))         # (128, 128)
    w128 = jnp.concatenate([fw1p, fw2p], axis=0).astype(bf16)       # (192, 128)

    def row(v, pad_val=0.0):
        return jnp.pad(v, ((0, 0), (0, LANES - v.shape[1])),
                       constant_values=pad_val)

    # Padding invariant (do not change): fb1/be3/fb2 pads = 0 and g3 pads = 1
    # keep the padded fc lanes exactly 0 through fc1/BN and sigmoid(0)=0.5 in
    # the padded output lanes, which the wrapper slices off.
    vec = jnp.concatenate([
        row(p["b1"]), row(p["g1"]), row(p["be1"]),
        row(p["b2"]), row(p["g2"]), row(p["be2"]),
        row(p["fb1"]),
        row(p["g3"], 1.0),
        row(p["be3"]),
        row(p["fb2"]),
    ], axis=0).astype(jnp.float32)                                  # (10, 128)

    masks = jnp.concatenate([make_conv_masks(B, H1, W1),            # m2: rows 0..7
                             make_conv_masks(B, H, W)], axis=0)     # m1: rows 8..57
    return masks, vec, w64, w128


def relation_forward(x_nchw, packed):
    masks, vec, w64, w128 = packed
    # NCHW -> channels-last flattened rows (B*H*W, C_IN)
    x_flat = jnp.transpose(x_nchw, (0, 2, 3, 1)).reshape(N0, C_IN)
    inputs = (x_flat, masks, vec, w64, w128)
    in_specs = [pl.BlockSpec(memory_space=pltpu.MemorySpace.VMEM) for _ in inputs]
    out = pl.pallas_call(
        relation_kernel,
        out_shape=jax.ShapeDtypeStruct((B, LANES), jnp.float32),
        in_specs=in_specs,
        out_specs=pl.BlockSpec(memory_space=pltpu.MemorySpace.VMEM),
    )(*inputs)
    return out[:, :N_CLASSES]                                       # (B, 5)


# ---------------------- pure-JAX reference (for sanity) ---------------------
def reference_forward(x, p):
    def conv(z, w_taps, b):
        w = jnp.transpose(
            w_taps.reshape(3, 3, w_taps.shape[1], w_taps.shape[2]), (3, 2, 0, 1))
        y = jax.lax.conv_general_dilated(
            z, w, (1, 1), ((1, 1), (1, 1)),
            dimension_numbers=("NCHW", "OIHW", "NCHW"))
        return y + b.reshape(1, -1, 1, 1)

    def bn2d(z, g, be):
        m = z.mean(axis=(0, 2, 3), keepdims=True)
        v = ((z - m) ** 2).mean(axis=(0, 2, 3), keepdims=True)
        return (z - m) / jnp.sqrt(v + EPS) * g.reshape(1, -1, 1, 1) + be.reshape(1, -1, 1, 1)

    def bn1d(z, g, be):
        m = z.mean(axis=0, keepdims=True)
        v = ((z - m) ** 2).mean(axis=0, keepdims=True)
        return (z - m) / jnp.sqrt(v + EPS) * g + be

    def pool(z):
        return jax.lax.reduce_window(z, -jnp.inf, jax.lax.max,
                                     (1, 1, 2, 2), (1, 1, 2, 2), "VALID")

    z = pool(jnp.maximum(bn2d(conv(x, p["w1"], p["b1"]), p["g1"], p["be1"]), 0.0))
    z = pool(jnp.maximum(bn2d(conv(z, p["w2"], p["b2"]), p["g2"], p["be2"]), 0.0))
    z = z.reshape(z.shape[0], -1)
    z = bn1d(jnp.maximum(z @ p["fw1"] + p["fb1"], 0.0), p["g3"], p["be3"])
    return jax.nn.sigmoid(z @ p["fw2"] + p["fb2"])


# --------------------------------- main --------------------------------------
if __name__ == "__main__":
    key = jax.random.PRNGKey(0)
    kx, kp = jax.random.split(key)
    x = jax.random.normal(kx, (B, C_IN, H, W), jnp.float32)   # NCHW like PyTorch
    params = init_params(kp)
    packed = prep_inputs(params)

    out = relation_forward(x, packed)
    out = jax.block_until_ready(out)

    ref = jax.block_until_ready(reference_forward(x, params))
    # Tolerance covers bf16 MXU operands (accumulation in f32); reference is f32.
    np.testing.assert_allclose(np.asarray(out), np.asarray(ref),
                               atol=2e-2, rtol=2e-2)

    assert out.shape == (B, N_CLASSES) and out.dtype == jnp.float32
    print("KERNEL_OK")
</pallas_src>

<mosaic_0001>
module attributes {stable_mosaic.version = 11 : i64} {
  func.func @relation_kernel(%arg0: memref<50x4xf32, #tpu.memory_space<vmem>>, %arg1: memref<58x9xf32, #tpu.memory_space<vmem>>, %arg2: memref<10x128xf32, #tpu.memory_space<vmem>>, %arg3: memref<612x64xbf16, #tpu.memory_space<vmem>>, %arg4: memref<192x128xbf16, #tpu.memory_space<vmem>>, %arg5: memref<2x128xf32, #tpu.memory_space<vmem>>) attributes {dimension_semantics = [], scalar_prefetch = 0 : i64, scratch_operands = 0 : i64, tpu.core_type = #tpu.core_type<tc>} {
    %c0 = arith.constant 0 : index
    %c0_0 = arith.constant 0 : index
    %0 = vector.load %arg0[%c0, %c0_0] : memref<50x4xf32, #tpu.memory_space<vmem>>, vector<50x4xf32>
    %c8 = arith.constant 8 : index
    %c0_1 = arith.constant 0 : index
    %1 = vector.load %arg1[%c8, %c0_1] : memref<58x9xf32, #tpu.memory_space<vmem>>, vector<50x9xf32>
    %cst = arith.constant 0.000000e+00 : f32
    %2 = vector.broadcast %cst : f32 to vector<6x4xf32>
    %3 = tpu.concatenate %2, %0, %2 in 0 : vector<6x4xf32>, vector<50x4xf32>, vector<6x4xf32> -> vector<62x4xf32>
    %4 = vector.extract_strided_slice %3 {offsets = [0, 0], sizes = [50, 4], strides = [1, 1]} : vector<62x4xf32> to vector<50x4xf32>
    %5 = vector.extract_strided_slice %1 {offsets = [0, 0], sizes = [50, 1], strides = [1, 1]} : vector<50x9xf32> to vector<50x1xf32>
    %6 = vector.broadcast %5 : vector<50x1xf32> to vector<50x4xf32>
    %7 = arith.mulf %4, %6 : vector<50x4xf32>
    %8 = vector.extract_strided_slice %3 {offsets = [1, 0], sizes = [50, 4], strides = [1, 1]} : vector<62x4xf32> to vector<50x4xf32>
    %9 = vector.extract_strided_slice %1 {offsets = [0, 1], sizes = [50, 1], strides = [1, 1]} : vector<50x9xf32> to vector<50x1xf32>
    %10 = vector.broadcast %9 : vector<50x1xf32> to vector<50x4xf32>
    %11 = arith.mulf %8, %10 : vector<50x4xf32>
    %12 = vector.extract_strided_slice %3 {offsets = [2, 0], sizes = [50, 4], strides = [1, 1]} : vector<62x4xf32> to vector<50x4xf32>
    %13 = vector.extract_strided_slice %1 {offsets = [0, 2], sizes = [50, 1], strides = [1, 1]} : vector<50x9xf32> to vector<50x1xf32>
    %14 = vector.broadcast %13 : vector<50x1xf32> to vector<50x4xf32>
    %15 = arith.mulf %12, %14 : vector<50x4xf32>
    %16 = vector.extract_strided_slice %3 {offsets = [5, 0], sizes = [50, 4], strides = [1, 1]} : vector<62x4xf32> to vector<50x4xf32>
    %17 = vector.extract_strided_slice %1 {offsets = [0, 3], sizes = [50, 1], strides = [1, 1]} : vector<50x9xf32> to vector<50x1xf32>
    %18 = vector.broadcast %17 : vector<50x1xf32> to vector<50x4xf32>
    %19 = arith.mulf %16, %18 : vector<50x4xf32>
    %20 = vector.extract_strided_slice %3 {offsets = [6, 0], sizes = [50, 4], strides = [1, 1]} : vector<62x4xf32> to vector<50x4xf32>
    %21 = vector.extract_strided_slice %1 {offsets = [0, 4], sizes = [50, 1], strides = [1, 1]} : vector<50x9xf32> to vector<50x1xf32>
    %22 = vector.broadcast %21 : vector<50x1xf32> to vector<50x4xf32>
    %23 = arith.mulf %20, %22 : vector<50x4xf32>
    %24 = vector.extract_strided_slice %3 {offsets = [7, 0], sizes = [50, 4], strides = [1, 1]} : vector<62x4xf32> to vector<50x4xf32>
    %25 = vector.extract_strided_slice %1 {offsets = [0, 5], sizes = [50, 1], strides = [1, 1]} : vector<50x9xf32> to vector<50x1xf32>
    %26 = vector.broadcast %25 : vector<50x1xf32> to vector<50x4xf32>
    %27 = arith.mulf %24, %26 : vector<50x4xf32>
    %28 = vector.extract_strided_slice %3 {offsets = [10, 0], sizes = [50, 4], strides = [1, 1]} : vector<62x4xf32> to vector<50x4xf32>
    %29 = vector.extract_strided_slice %1 {offsets = [0, 6], sizes = [50, 1], strides = [1, 1]} : vector<50x9xf32> to vector<50x1xf32>
    %30 = vector.broadcast %29 : vector<50x1xf32> to vector<50x4xf32>
    %31 = arith.mulf %28, %30 : vector<50x4xf32>
    %32 = vector.extract_strided_slice %3 {offsets = [11, 0], sizes = [50, 4], strides = [1, 1]} : vector<62x4xf32> to vector<50x4xf32>
    %33 = vector.extract_strided_slice %1 {offsets = [0, 7], sizes = [50, 1], strides = [1, 1]} : vector<50x9xf32> to vector<50x1xf32>
    %34 = vector.broadcast %33 : vector<50x1xf32> to vector<50x4xf32>
    %35 = arith.mulf %32, %34 : vector<50x4xf32>
    %36 = vector.extract_strided_slice %3 {offsets = [12, 0], sizes = [50, 4], strides = [1, 1]} : vector<62x4xf32> to vector<50x4xf32>
    %37 = vector.extract_strided_slice %1 {offsets = [0, 8], sizes = [50, 1], strides = [1, 1]} : vector<50x9xf32> to vector<50x1xf32>
    %38 = vector.broadcast %37 : vector<50x1xf32> to vector<50x4xf32>
    %39 = arith.mulf %36, %38 : vector<50x4xf32>
    %40 = tpu.concatenate %7, %11, %15, %19, %23, %27, %31, %35, %39 in 1 : vector<50x4xf32>, vector<50x4xf32>, vector<50x4xf32>, vector<50x4xf32>, vector<50x4xf32>, vector<50x4xf32>, vector<50x4xf32>, vector<50x4xf32>, vector<50x4xf32> -> vector<50x36xf32>
    %c576 = arith.constant 576 : index
    %c0_2 = arith.constant 0 : index
    %41 = vector.load %arg3[%c576, %c0_2] : memref<612x64xbf16, #tpu.memory_space<vmem>>, vector<36x64xbf16>
    %42 = arith.truncf %40 : vector<50x36xf32> to vector<50x36xbf16>
    %cst_3 = arith.constant dense<0.000000e+00> : vector<50x64xf32>
    %43 = tpu.matmul %42, %41, %cst_3 {dimension_numbers = #tpu.dot_dimension_numbers<[1], [0], [0], [1], [0, 0, 1, 1], [], []>} : vector<50x36xbf16>, vector<36x64xbf16>, vector<50x64xf32> -> vector<50x64xf32>
    %c0_4 = arith.constant 0 : index
    %c0_5 = arith.constant 0 : index
    %44 = vector.load %arg2[%c0_4, %c0_5] : memref<10x128xf32, #tpu.memory_space<vmem>>, vector<1x64xf32>
    %45 = vector.broadcast %44 : vector<1x64xf32> to vector<50x64xf32>
    %46 = arith.addf %43, %45 : vector<50x64xf32>
    %c1 = arith.constant 1 : index
    %c0_6 = arith.constant 0 : index
    %47 = vector.load %arg2[%c1, %c0_6] : memref<10x128xf32, #tpu.memory_space<vmem>>, vector<1x64xf32>
    %c2 = arith.constant 2 : index
    %c0_7 = arith.constant 0 : index
    %48 = vector.load %arg2[%c2, %c0_7] : memref<10x128xf32, #tpu.memory_space<vmem>>, vector<1x64xf32>
    %49 = arith.mulf %46, %46 : vector<50x64xf32>
    %50 = tpu.concatenate %46, %49 in 1 : vector<50x64xf32>, vector<50x64xf32> -> vector<50x128xf32>
    %cst_8 = arith.constant dense<0.000000e+00> : vector<128xf32>
    %51 = vector.multi_reduction <add>, %50, %cst_8 [0] : vector<50x128xf32> to vector<128xf32>
    %52 = vector.shape_cast %51 : vector<128xf32> to vector<1x128xf32>
    %53 = vector.extract_strided_slice %52 {offsets = [0, 0], sizes = [1, 64], strides = [1, 1]} : vector<1x128xf32> to vector<1x64xf32>
    %cst_9 = arith.constant 2.000000e-02 : f32
    %54 = vector.broadcast %cst_9 : f32 to vector<1x64xf32>
    %55 = arith.mulf %53, %54 : vector<1x64xf32>
    %56 = vector.extract_strided_slice %52 {offsets = [0, 64], sizes = [1, 64], strides = [1, 1]} : vector<1x128xf32> to vector<1x64xf32>
    %cst_10 = arith.constant 2.000000e-02 : f32
    %57 = vector.broadcast %cst_10 : f32 to vector<1x64xf32>
    %58 = arith.mulf %56, %57 : vector<1x64xf32>
    %59 = arith.mulf %55, %55 : vector<1x64xf32>
    %60 = arith.subf %58, %59 : vector<1x64xf32>
    %cst_11 = arith.constant 9.99999974E-6 : f32
    %61 = vector.broadcast %cst_11 : f32 to vector<1x64xf32>
    %62 = arith.addf %60, %61 : vector<1x64xf32>
    %63 = math.rsqrt %62 : vector<1x64xf32>
    %64 = arith.mulf %63, %47 : vector<1x64xf32>
    %65 = vector.broadcast %64 : vector<1x64xf32> to vector<50x64xf32>
    %66 = arith.mulf %46, %65 : vector<50x64xf32>
    %67 = arith.mulf %55, %64 : vector<1x64xf32>
    %68 = arith.subf %48, %67 : vector<1x64xf32>
    %69 = vector.broadcast %68 : vector<1x64xf32> to vector<50x64xf32>
    %70 = arith.addf %66, %69 : vector<50x64xf32>
    %cst_12 = arith.constant 0.000000e+00 : f32
    %71 = vector.broadcast %cst_12 : f32 to vector<50x64xf32>
    %72 = arith.maximumf %70, %71 : vector<50x64xf32>
    %cst_13 = arith.constant 0.000000e+00 : f32
    %73 = vector.broadcast %cst_13 : f32 to vector<6x64xf32>
    %74 = tpu.concatenate %72, %73 in 0 : vector<50x64xf32>, vector<6x64xf32> -> vector<56x64xf32>
    %75 = vector.extract_strided_slice %74 {offsets = [0, 0], sizes = [55, 64], strides = [1, 1]} : vector<56x64xf32> to vector<55x64xf32>
    %76 = vector.extract_strided_slice %74 {offsets = [1, 0], sizes = [55, 64], strides = [1, 1]} : vector<56x64xf32> to vector<55x64xf32>
    %77 = arith.maximumf %75, %76 : vector<55x64xf32>
    %78 = vector.extract_strided_slice %77 {offsets = [0, 0], sizes = [50, 64], strides = [1, 1]} : vector<55x64xf32> to vector<50x64xf32>
    %79 = vector.extract_strided_slice %77 {offsets = [5, 0], sizes = [50, 64], strides = [1, 1]} : vector<55x64xf32> to vector<50x64xf32>
    %80 = arith.maximumf %78, %79 : vector<50x64xf32>
    %81 = vector.extract_strided_slice %80 {offsets = [0, 0], sizes = [1, 64], strides = [1, 1]} : vector<50x64xf32> to vector<1x64xf32>
    %82 = vector.extract_strided_slice %80 {offsets = [2, 0], sizes = [1, 64], strides = [1, 1]} : vector<50x64xf32> to vector<1x64xf32>
    %83 = vector.extract_strided_slice %80 {offsets = [10, 0], sizes = [1, 64], strides = [1, 1]} : vector<50x64xf32> to vector<1x64xf32>
    %84 = vector.extract_strided_slice %80 {offsets = [12, 0], sizes = [1, 64], strides = [1, 1]} : vector<50x64xf32> to vector<1x64xf32>
    %85 = vector.extract_strided_slice %80 {offsets = [25, 0], sizes = [1, 64], strides = [1, 1]} : vector<50x64xf32> to vector<1x64xf32>
    %86 = vector.extract_strided_slice %80 {offsets = [27, 0], sizes = [1, 64], strides = [1, 1]} : vector<50x64xf32> to vector<1x64xf32>
    %87 = vector.extract_strided_slice %80 {offsets = [35, 0], sizes = [1, 64], strides = [1, 1]} : vector<50x64xf32> to vector<1x64xf32>
    %88 = vector.extract_strided_slice %80 {offsets = [37, 0], sizes = [1, 64], strides = [1, 1]} : vector<50x64xf32> to vector<1x64xf32>
    %89 = tpu.concatenate %81, %82, %83, %84, %85, %86, %87, %88 in 0 : vector<1x64xf32>, vector<1x64xf32>, vector<1x64xf32>, vector<1x64xf32>, vector<1x64xf32>, vector<1x64xf32>, vector<1x64xf32>, vector<1x64xf32> -> vector<8x64xf32>
    %c0_14 = arith.constant 0 : index
    %c0_15 = arith.constant 0 : index
    %90 = vector.load %arg1[%c0_14, %c0_15] : memref<58x9xf32, #tpu.memory_space<vmem>>, vector<8x9xf32>
    %cst_16 = arith.constant 0.000000e+00 : f32
    %91 = vector.broadcast %cst_16 : f32 to vector<3x64xf32>
    %92 = tpu.concatenate %91, %89, %91 in 0 : vector<3x64xf32>, vector<8x64xf32>, vector<3x64xf32> -> vector<14x64xf32>
    %93 = vector.extract_strided_slice %92 {offsets = [0, 0], sizes = [8, 64], strides = [1, 1]} : vector<14x64xf32> to vector<8x64xf32>
    %94 = vector.extract_strided_slice %90 {offsets = [0, 0], sizes = [8, 1], strides = [1, 1]} : vector<8x9xf32> to vector<8x1xf32>
    %95 = vector.broadcast %94 : vector<8x1xf32> to vector<8x64xf32>
    %96 = arith.mulf %93, %95 : vector<8x64xf32>
    %97 = vector.extract_strided_slice %92 {offsets = [1, 0], sizes = [8, 64], strides = [1, 1]} : vector<14x64xf32> to vector<8x64xf32>
    %98 = vector.extract_strided_slice %90 {offsets = [0, 1], sizes = [8, 1], strides = [1, 1]} : vector<8x9xf32> to vector<8x1xf32>
    %99 = vector.broadcast %98 : vector<8x1xf32> to vector<8x64xf32>
    %100 = arith.mulf %97, %99 : vector<8x64xf32>
    %101 = vector.extract_strided_slice %92 {offsets = [2, 0], sizes = [8, 64], strides = [1, 1]} : vector<14x64xf32> to vector<8x64xf32>
    %102 = vector.extract_strided_slice %90 {offsets = [0, 2], sizes = [8, 1], strides = [1, 1]} : vector<8x9xf32> to vector<8x1xf32>
    %103 = vector.broadcast %102 : vector<8x1xf32> to vector<8x64xf32>
    %104 = arith.mulf %101, %103 : vector<8x64xf32>
    %105 = vector.extract_strided_slice %92 {offsets = [2, 0], sizes = [8, 64], strides = [1, 1]} : vector<14x64xf32> to vector<8x64xf32>
    %106 = vector.extract_strided_slice %90 {offsets = [0, 3], sizes = [8, 1], strides = [1, 1]} : vector<8x9xf32> to vector<8x1xf32>
    %107 = vector.broadcast %106 : vector<8x1xf32> to vector<8x64xf32>
    %108 = arith.mulf %105, %107 : vector<8x64xf32>
    %109 = vector.extract_strided_slice %92 {offsets = [3, 0], sizes = [8, 64], strides = [1, 1]} : vector<14x64xf32> to vector<8x64xf32>
    %110 = vector.extract_strided_slice %90 {offsets = [0, 4], sizes = [8, 1], strides = [1, 1]} : vector<8x9xf32> to vector<8x1xf32>
    %111 = vector.broadcast %110 : vector<8x1xf32> to vector<8x64xf32>
    %112 = arith.mulf %109, %111 : vector<8x64xf32>
    %113 = vector.extract_strided_slice %92 {offsets = [4, 0], sizes = [8, 64], strides = [1, 1]} : vector<14x64xf32> to vector<8x64xf32>
    %114 = vector.extract_strided_slice %90 {offsets = [0, 5], sizes = [8, 1], strides = [1, 1]} : vector<8x9xf32> to vector<8x1xf32>
    %115 = vector.broadcast %114 : vector<8x1xf32> to vector<8x64xf32>
    %116 = arith.mulf %113, %115 : vector<8x64xf32>
    %117 = vector.extract_strided_slice %92 {offsets = [4, 0], sizes = [8, 64], strides = [1, 1]} : vector<14x64xf32> to vector<8x64xf32>
    %118 = vector.extract_strided_slice %90 {offsets = [0, 6], sizes = [8, 1], strides = [1, 1]} : vector<8x9xf32> to vector<8x1xf32>
    %119 = vector.broadcast %118 : vector<8x1xf32> to vector<8x64xf32>
    %120 = arith.mulf %117, %119 : vector<8x64xf32>
    %121 = vector.extract_strided_slice %92 {offsets = [5, 0], sizes = [8, 64], strides = [1, 1]} : vector<14x64xf32> to vector<8x64xf32>
    %122 = vector.extract_strided_slice %90 {offsets = [0, 7], sizes = [8, 1], strides = [1, 1]} : vector<8x9xf32> to vector<8x1xf32>
    %123 = vector.broadcast %122 : vector<8x1xf32> to vector<8x64xf32>
    %124 = arith.mulf %121, %123 : vector<8x64xf32>
    %125 = vector.extract_strided_slice %92 {offsets = [6, 0], sizes = [8, 64], strides = [1, 1]} : vector<14x64xf32> to vector<8x64xf32>
    %126 = vector.extract_strided_slice %90 {offsets = [0, 8], sizes = [8, 1], strides = [1, 1]} : vector<8x9xf32> to vector<8x1xf32>
    %127 = vector.broadcast %126 : vector<8x1xf32> to vector<8x64xf32>
    %128 = arith.mulf %125, %127 : vector<8x64xf32>
    %cst_17 = arith.constant 0.000000e+00 : f32
    %129 = vector.broadcast %cst_17 : f32 to vector<8x64xf32>
    %c0_18 = arith.constant 0 : index
    %c0_19 = arith.constant 0 : index
    %130 = vector.load %arg3[%c0_18, %c0_19] : memref<612x64xbf16, #tpu.memory_space<vmem>>, vector<64x64xbf16>
    %131 = arith.truncf %96 : vector<8x64xf32> to vector<8x64xbf16>
    %cst_20 = arith.constant dense<0.000000e+00> : vector<8x64xf32>
    %132 = tpu.matmul %131, %130, %cst_20 {dimension_numbers = #tpu.dot_dimension_numbers<[1], [0], [0], [1], [0, 0, 1, 1], [], []>} : vector<8x64xbf16>, vector<64x64xbf16>, vector<8x64xf32> -> vector<8x64xf32>
    %133 = arith.addf %129, %132 : vector<8x64xf32>
    %c64 = arith.constant 64 : index
    %c0_21 = arith.constant 0 : index
    %134 = vector.load %arg3[%c64, %c0_21] : memref<612x64xbf16, #tpu.memory_space<vmem>>, vector<64x64xbf16>
    %135 = arith.truncf %100 : vector<8x64xf32> to vector<8x64xbf16>
    %cst_22 = arith.constant dense<0.000000e+00> : vector<8x64xf32>
    %136 = tpu.matmul %135, %134, %cst_22 {dimension_numbers = #tpu.dot_dimension_numbers<[1], [0], [0], [1], [0, 0, 1, 1], [], []>} : vector<8x64xbf16>, vector<64x64xbf16>, vector<8x64xf32> -> vector<8x64xf32>
    %137 = arith.addf %133, %136 : vector<8x64xf32>
    %c128 = arith.constant 128 : index
    %c0_23 = arith.constant 0 : index
    %138 = vector.load %arg3[%c128, %c0_23] : memref<612x64xbf16, #tpu.memory_space<vmem>>, vector<64x64xbf16>
    %139 = arith.truncf %104 : vector<8x64xf32> to vector<8x64xbf16>
    %cst_24 = arith.constant dense<0.000000e+00> : vector<8x64xf32>
    %140 = tpu.matmul %139, %138, %cst_24 {dimension_numbers = #tpu.dot_dimension_numbers<[1], [0], [0], [1], [0, 0, 1, 1], [], []>} : vector<8x64xbf16>, vector<64x64xbf16>, vector<8x64xf32> -> vector<8x64xf32>
    %141 = arith.addf %137, %140 : vector<8x64xf32>
    %c192 = arith.constant 192 : index
    %c0_25 = arith.constant 0 : index
    %142 = vector.load %arg3[%c192, %c0_25] : memref<612x64xbf16, #tpu.memory_space<vmem>>, vector<64x64xbf16>
    %143 = arith.truncf %108 : vector<8x64xf32> to vector<8x64xbf16>
    %cst_26 = arith.constant dense<0.000000e+00> : vector<8x64xf32>
    %144 = tpu.matmul %143, %142, %cst_26 {dimension_numbers = #tpu.dot_dimension_numbers<[1], [0], [0], [1], [0, 0, 1, 1], [], []>} : vector<8x64xbf16>, vector<64x64xbf16>, vector<8x64xf32> -> vector<8x64xf32>
    %145 = arith.addf %141, %144 : vector<8x64xf32>
    %c256 = arith.constant 256 : index
    %c0_27 = arith.constant 0 : index
    %146 = vector.load %arg3[%c256, %c0_27] : memref<612x64xbf16, #tpu.memory_space<vmem>>, vector<64x64xbf16>
    %147 = arith.truncf %112 : vector<8x64xf32> to vector<8x64xbf16>
    %cst_28 = arith.constant dense<0.000000e+00> : vector<8x64xf32>
    %148 = tpu.matmul %147, %146, %cst_28 {dimension_numbers = #tpu.dot_dimension_numbers<[1], [0], [0], [1], [0, 0, 1, 1], [], []>} : vector<8x64xbf16>, vector<64x64xbf16>, vector<8x64xf32> -> vector<8x64xf32>
    %149 = arith.addf %145, %148 : vector<8x64xf32>
    %c320 = arith.constant 320 : index
    %c0_29 = arith.constant 0 : index
    %150 = vector.load %arg3[%c320, %c0_29] : memref<612x64xbf16, #tpu.memory_space<vmem>>, vector<64x64xbf16>
    %151 = arith.truncf %116 : vector<8x64xf32> to vector<8x64xbf16>
    %cst_30 = arith.constant dense<0.000000e+00> : vector<8x64xf32>
    %152 = tpu.matmul %151, %150, %cst_30 {dimension_numbers = #tpu.dot_dimension_numbers<[1], [0], [0], [1], [0, 0, 1, 1], [], []>} : vector<8x64xbf16>, vector<64x64xbf16>, vector<8x64xf32> -> vector<8x64xf32>
    %153 = arith.addf %149, %152 : vector<8x64xf32>
    %c384 = arith.constant 384 : index
    %c0_31 = arith.constant 0 : index
    %154 = vector.load %arg3[%c384, %c0_31] : memref<612x64xbf16, #tpu.memory_space<vmem>>, vector<64x64xbf16>
    %155 = arith.truncf %120 : vector<8x64xf32> to vector<8x64xbf16>
    %cst_32 = arith.constant dense<0.000000e+00> : vector<8x64xf32>
    %156 = tpu.matmul %155, %154, %cst_32 {dimension_numbers = #tpu.dot_dimension_numbers<[1], [0], [0], [1], [0, 0, 1, 1], [], []>} : vector<8x64xbf16>, vector<64x64xbf16>, vector<8x64xf32> -> vector<8x64xf32>
    %157 = arith.addf %153, %156 : vector<8x64xf32>
    %c448 = arith.constant 448 : index
    %c0_33 = arith.constant 0 : index
    %158 = vector.load %arg3[%c448, %c0_33] : memref<612x64xbf16, #tpu.memory_space<vmem>>, vector<64x64xbf16>
    %159 = arith.truncf %124 : vector<8x64xf32> to vector<8x64xbf16>
    %cst_34 = arith.constant dense<0.000000e+00> : vector<8x64xf32>
    %160 = tpu.matmul %159, %158, %cst_34 {dimension_numbers = #tpu.dot_dimension_numbers<[1], [0], [0], [1], [0, 0, 1, 1], [], []>} : vector<8x64xbf16>, vector<64x64xbf16>, vector<8x64xf32> -> vector<8x64xf32>
    %161 = arith.addf %157, %160 : vector<8x64xf32>
    %c512 = arith.constant 512 : index
    %c0_35 = arith.constant 0 : index
    %162 = vector.load %arg3[%c512, %c0_35] : memref<612x64xbf16, #tpu.memory_space<vmem>>, vector<64x64xbf16>
    %163 = arith.truncf %128 : vector<8x64xf32> to vector<8x64xbf16>
    %cst_36 = arith.constant dense<0.000000e+00> : vector<8x64xf32>
    %164 = tpu.matmul %163, %162, %cst_36 {dimension_numbers = #tpu.dot_dimension_numbers<[1], [0], [0], [1], [0, 0, 1, 1], [], []>} : vector<8x64xbf16>, vector<64x64xbf16>, vector<8x64xf32> -> vector<8x64xf32>
    %165 = arith.addf %161, %164 : vector<8x64xf32>
    %c3 = arith.constant 3 : index
    %c0_37 = arith.constant 0 : index
    %166 = vector.load %arg2[%c3, %c0_37] : memref<10x128xf32, #tpu.memory_space<vmem>>, vector<1x64xf32>
    %167 = vector.broadcast %166 : vector<1x64xf32> to vector<8x64xf32>
    %168 = arith.addf %165, %167 : vector<8x64xf32>
    %c4 = arith.constant 4 : index
    %c0_38 = arith.constant 0 : index
    %169 = vector.load %arg2[%c4, %c0_38] : memref<10x128xf32, #tpu.memory_space<vmem>>, vector<1x64xf32>
    %c5 = arith.constant 5 : index
    %c0_39 = arith.constant 0 : index
    %170 = vector.load %arg2[%c5, %c0_39] : memref<10x128xf32, #tpu.memory_space<vmem>>, vector<1x64xf32>
    %171 = arith.mulf %168, %168 : vector<8x64xf32>
    %172 = tpu.concatenate %168, %171 in 1 : vector<8x64xf32>, vector<8x64xf32> -> vector<8x128xf32>
    %cst_40 = arith.constant dense<0.000000e+00> : vector<128xf32>
    %173 = vector.multi_reduction <add>, %172, %cst_40 [0] : vector<8x128xf32> to vector<128xf32>
    %174 = vector.shape_cast %173 : vector<128xf32> to vector<1x128xf32>
    %175 = vector.extract_strided_slice %174 {offsets = [0, 0], sizes = [1, 64], strides = [1, 1]} : vector<1x128xf32> to vector<1x64xf32>
    %cst_41 = arith.constant 1.250000e-01 : f32
    %176 = vector.broadcast %cst_41 : f32 to vector<1x64xf32>
    %177 = arith.mulf %175, %176 : vector<1x64xf32>
    %178 = vector.extract_strided_slice %174 {offsets = [0, 64], sizes = [1, 64], strides = [1, 1]} : vector<1x128xf32> to vector<1x64xf32>
    %cst_42 = arith.constant 1.250000e-01 : f32
    %179 = vector.broadcast %cst_42 : f32 to vector<1x64xf32>
    %180 = arith.mulf %178, %179 : vector<1x64xf32>
    %181 = arith.mulf %177, %177 : vector<1x64xf32>
    %182 = arith.subf %180, %181 : vector<1x64xf32>
    %cst_43 = arith.constant 9.99999974E-6 : f32
    %183 = vector.broadcast %cst_43 : f32 to vector<1x64xf32>
    %184 = arith.addf %182, %183 : vector<1x64xf32>
    %185 = math.rsqrt %184 : vector<1x64xf32>
    %186 = arith.mulf %185, %169 : vector<1x64xf32>
    %187 = vector.broadcast %186 : vector<1x64xf32> to vector<8x64xf32>
    %188 = arith.mulf %168, %187 : vector<8x64xf32>
    %189 = arith.mulf %177, %186 : vector<1x64xf32>
    %190 = arith.subf %170, %189 : vector<1x64xf32>
    %191 = vector.broadcast %190 : vector<1x64xf32> to vector<8x64xf32>
    %192 = arith.addf %188, %191 : vector<8x64xf32>
    %cst_44 = arith.constant 0.000000e+00 : f32
    %193 = vector.broadcast %cst_44 : f32 to vector<8x64xf32>
    %194 = arith.maximumf %192, %193 : vector<8x64xf32>
    %cst_45 = arith.constant 0.000000e+00 : f32
    %195 = vector.broadcast %cst_45 : f32 to vector<3x64xf32>
    %196 = tpu.concatenate %194, %195 in 0 : vector<8x64xf32>, vector<3x64xf32> -> vector<11x64xf32>
    %197 = vector.extract_strided_slice %196 {offsets = [0, 0], sizes = [10, 64], strides = [1, 1]} : vector<11x64xf32> to vector<10x64xf32>
    %198 = vector.extract_strided_slice %196 {offsets = [1, 0], sizes = [10, 64], strides = [1, 1]} : vector<11x64xf32> to vector<10x64xf32>
    %199 = arith.maximumf %197, %198 : vector<10x64xf32>
    %200 = vector.extract_strided_slice %199 {offsets = [0, 0], sizes = [8, 64], strides = [1, 1]} : vector<10x64xf32> to vector<8x64xf32>
    %201 = vector.extract_strided_slice %199 {offsets = [2, 0], sizes = [8, 64], strides = [1, 1]} : vector<10x64xf32> to vector<8x64xf32>
    %202 = arith.maximumf %200, %201 : vector<8x64xf32>
    %203 = vector.extract_strided_slice %202 {offsets = [0, 0], sizes = [1, 64], strides = [1, 1]} : vector<8x64xf32> to vector<1x64xf32>
    %204 = vector.extract_strided_slice %202 {offsets = [4, 0], sizes = [1, 64], strides = [1, 1]} : vector<8x64xf32> to vector<1x64xf32>
    %205 = tpu.concatenate %203, %204 in 0 : vector<1x64xf32>, vector<1x64xf32> -> vector<2x64xf32>
    %c0_46 = arith.constant 0 : index
    %c0_47 = arith.constant 0 : index
    %206 = vector.load %arg4[%c0_46, %c0_47] : memref<192x128xbf16, #tpu.memory_space<vmem>>, vector<64x128xbf16>
    %207 = arith.truncf %205 : vector<2x64xf32> to vector<2x64xbf16>
    %cst_48 = arith.constant dense<0.000000e+00> : vector<2x128xf32>
    %208 = tpu.matmul %207, %206, %cst_48 {dimension_numbers = #tpu.dot_dimension_numbers<[1], [0], [0], [1], [0, 0, 1, 1], [], []>} : vector<2x64xbf16>, vector<64x128xbf16>, vector<2x128xf32> -> vector<2x128xf32>
    %c6 = arith.constant 6 : index
    %c0_49 = arith.constant 0 : index
    %209 = vector.load %arg2[%c6, %c0_49] : memref<10x128xf32, #tpu.memory_space<vmem>>, vector<1x128xf32>
    %210 = vector.broadcast %209 : vector<1x128xf32> to vector<2x128xf32>
    %211 = arith.addf %208, %210 : vector<2x128xf32>
    %cst_50 = arith.constant 0.000000e+00 : f32
    %212 = vector.broadcast %cst_50 : f32 to vector<2x128xf32>
    %213 = arith.maximumf %211, %212 : vector<2x128xf32>
    %c7 = arith.constant 7 : index
    %c0_51 = arith.constant 0 : index
    %214 = vector.load %arg2[%c7, %c0_51] : memref<10x128xf32, #tpu.memory_space<vmem>>, vector<1x128xf32>
    %c8_52 = arith.constant 8 : index
    %c0_53 = arith.constant 0 : index
    %215 = vector.load %arg2[%c8_52, %c0_53] : memref<10x128xf32, #tpu.memory_space<vmem>>, vector<1x128xf32>
    %216 = arith.mulf %213, %213 : vector<2x128xf32>
    %217 = tpu.concatenate %213, %216 in 1 : vector<2x128xf32>, vector<2x128xf32> -> vector<2x256xf32>
    %cst_54 = arith.constant dense<0.000000e+00> : vector<256xf32>
    %218 = vector.multi_reduction <add>, %217, %cst_54 [0] : vector<2x256xf32> to vector<256xf32>
    %219 = vector.shape_cast %218 : vector<256xf32> to vector<1x256xf32>
    %220 = vector.extract_strided_slice %219 {offsets = [0, 0], sizes = [1, 128], strides = [1, 1]} : vector<1x256xf32> to vector<1x128xf32>
    %cst_55 = arith.constant 5.000000e-01 : f32
    %221 = vector.broadcast %cst_55 : f32 to vector<1x128xf32>
    %222 = arith.mulf %220, %221 : vector<1x128xf32>
    %223 = vector.extract_strided_slice %219 {offsets = [0, 128], sizes = [1, 128], strides = [1, 1]} : vector<1x256xf32> to vector<1x128xf32>
    %cst_56 = arith.constant 5.000000e-01 : f32
    %224 = vector.broadcast %cst_56 : f32 to vector<1x128xf32>
    %225 = arith.mulf %223, %224 : vector<1x128xf32>
    %226 = arith.mulf %222, %222 : vector<1x128xf32>
    %227 = arith.subf %225, %226 : vector<1x128xf32>
    %cst_57 = arith.constant 9.99999974E-6 : f32
    %228 = vector.broadcast %cst_57 : f32 to vector<1x128xf32>
    %229 = arith.addf %227, %228 : vector<1x128xf32>
    %230 = math.rsqrt %229 : vector<1x128xf32>
    %231 = arith.mulf %230, %214 : vector<1x128xf32>
    %232 = vector.broadcast %231 : vector<1x128xf32> to vector<2x128xf32>
    %233 = arith.mulf %213, %232 : vector<2x128xf32>
    %234 = arith.mulf %222, %231 : vector<1x128xf32>
    %235 = arith.subf %215, %234 : vector<1x128xf32>
    %236 = vector.broadcast %235 : vector<1x128xf32> to vector<2x128xf32>
    %237 = arith.addf %233, %236 : vector<2x128xf32>
    %c64_58 = arith.constant 64 : index
    %c0_59 = arith.constant 0 : index
    %238 = vector.load %arg4[%c64_58, %c0_59] : memref<192x128xbf16, #tpu.memory_space<vmem>>, vector<128x128xbf16>
    %239 = arith.truncf %237 : vector<2x128xf32> to vector<2x128xbf16>
    %cst_60 = arith.constant dense<0.000000e+00> : vector<2x128xf32>
    %240 = tpu.matmul %239, %238, %cst_60 {dimension_numbers = #tpu.dot_dimension_numbers<[1], [0], [0], [1], [0, 0, 1, 1], [], []>} : vector<2x128xbf16>, vector<128x128xbf16>, vector<2x128xf32> -> vector<2x128xf32>
    %c9 = arith.constant 9 : index
    %c0_61 = arith.constant 0 : index
    %241 = vector.load %arg2[%c9, %c0_61] : memref<10x128xf32, #tpu.memory_space<vmem>>, vector<1x128xf32>
    %242 = vector.broadcast %241 : vector<1x128xf32> to vector<2x128xf32>
    %243 = arith.addf %240, %242 : vector<2x128xf32>
    %244 = arith.negf %243 : vector<2x128xf32>
    %245 = math.exp %244 : vector<2x128xf32>
    %cst_62 = arith.constant 1.000000e+00 : f32
    %246 = vector.broadcast %cst_62 : f32 to vector<2x128xf32>
    %247 = arith.addf %246, %245 : vector<2x128xf32>
    %248 = arith.divf %246, %247 : vector<2x128xf32>
    %c0_63 = arith.constant 0 : index
    %c0_64 = arith.constant 0 : index
    %249 = vector.load %arg5[%c0_63, %c0_64] : memref<2x128xf32, #tpu.memory_space<vmem>>, vector<2x128xf32>
    tpu.vector_store %arg5[%c0_63, %c0_64], %248 {strides = array<i32>} : memref<2x128xf32, #tpu.memory_space<vmem>>, vector<2x128xf32>,
    return
  }
}

</mosaic_0001>

<bundles_post_ra>
// kernel: tpu_custom_call.1
= control target key start
LH: loop header
LB: loop body
LE: loop exit
PB: predicated region body
PF: predicated region fallthrough
CT: control target
= control target key end

     0   :  { %v3638_v3 = vmov 3   ;;  %v3640_v4 = vmov 2   ;;  %v3639_v5 = vmov 1   ;;  %s3628_s0 = inlined_call_operand.vmem [shape: f32[50,4], index: 0, kind: input, shape index: {}]   ;;  %s3629_s1 = inlined_call_operand.vmem [shape: f32[58,9], index: 1, kind: input, shape index: {}]   ;;  %s3630_s2 = inlined_call_operand.vmem [shape: f32[10,128], index: 2, kind: input, shape index: {}]   ;;  %s3631_s3 = inlined_call_operand.vmem [shape: bf16[612,64], index: 3, kind: input, shape index: {}]   ;;  %s3632_s4 = inlined_call_operand.vmem [shape: bf16[192,128], index: 4, kind: input, shape index: {}]   ;;  %s3633_s5 = inlined_call_operand.hbm [shape: f32[2,128], index: 5, kind: output, shape index: {}]  }
   0x1   :  { %v2550_v0 = vld [vmem:[%s3629_s1 + $0x18] sm:$0xff]  ;;  %v2555_v1 = vld [vmem:[%s3629_s1 + $0x10] sm:$0xff]  ;;  %v2560_v2 = vld [vmem:[%s3629_s1 + $0x8] sm:$0xff]  ;;  %2280 = vset.pattern.permute.xlu0 %v3638_v3  ;;  %2279 = vset.pattern.permute.xlu2 %v3640_v4 }
   0x2   :  { %2277 = vset.pattern.permute.xlu1 %v3639_v5  ;;  %160 = vperm.xlu2 %2279, %v2555_v1  }
   0x3   :  { %114 = vperm.xlu1 %2277, %v2550_v0   ;;  %206 = vperm.xlu0 %2280, %v2560_v2  }
   0x4   :  { %10 = vsyncpa [#allocation3], 0  ;;  %v3644_v6 = vmov 8   ;;  %v2577_v7 = vld [vmem:[%s3629_s1 + $0x20] sm:$0xff]  ;;  %v3637_v8 = vmov 4   ;;  %v3635_v9 = vmov 7  }
   0x5   :  { %v3636_v10 = vmov 5   ;;  %v3634_v11 = vmov 6   ;;  %v2603_v12 = vld [vmem:[%s3629_s1 + $0x38] sm:$0x3]  ;;  %v2618_v13 = vld [vmem:[%s3629_s1 + $0x28] sm:$0xff]  ;;  %v2628_v14 = vld [vmem:[%s3629_s1 + $0x30] sm:$0xff] }
   0x6   :  { %v2672_v23 = vld [vmem:[%s3628_s0 + $0x8] sm:$0xff]  ;;  %v24_v24 = vld [vmem:[%s3628_s0 + $0x10] sm:$0xff]  ;;  %v2685_v26 = vld [vmem:[%s3628_s0 + $0x18] sm:$0xff]  ;;  %vm43_vm0 = vcmask 1045504   ;;  %vm177_vm1 = vcmask 1041408   ;;  %v2505_v44 = vmov 0  }
   0x7   :  { %v45_v28 = vrot.slane %v2672_v23, 2  ;;  %v47_v29 = vrot.slane %v24_v24, 2  ;;  %v49_v31 = vrot.slane %v2685_v26, 2  ;;  %v22_v55 = vld [vmem:[%s3628_s0] sm:$0xff]  ;;  %vm422_vm2 = vcmask 1042432   ;;  %s2506_s15 = smov 16  }
   0x8   :  { %v44_v60 = vrot.slane %v22_v55, 2  ;;  %vm128_vm3 = vcmask 1040384   ;;  %vm226_vm4 = vcmask 1044480   ;;  %vm323_vm5 = vcmask 1046528   ;;  %s2507_s16 = smov 28   ;;  %s2508_s17 = smov 4  }
   0x9   :  { %v2691_v32 = vsel %vm43_vm0, %v45_v28, %v47_v29  ;;  %v2704_v36 = vsel %vm43_vm0, %v47_v29, %v49_v31  ;;  %vm471_vm6 = vcmask 1043456   ;;  %s2509_s20 = smov 12   ;;  %s2510_s21 = smov 8   ;;  %vm830_vm7 = vcmask 31744  }
   0xa   :  { %163 = vperm.xlu2 %2279, %v2550_v0   ;;  %v2770_v62 = vsel %vm43_vm0, 0.0, %v44_v60  ;;  %v2773_v63 = vsel %vm43_vm0, %v44_v60, %v45_v28  ;;  %s2511_s22 = smov 24   ;;  %s2512_s23 = smov 20   ;;  %vm838_vm8 = vcmask 64512   ;;  %vm846_vm9 = vcmask 97280  }
   0xb   :  { %2278 = vset.pattern.permute.xlu1 %v3640_v4  ;;  %2291 = vset.pattern.permute.xlu0 %v3644_v6  ;;  %s2513_s24 = smov 32   ;;  %vm854_vm10 = vcmask 130048   ;;  %vm862_vm11 = vcmask 162816   ;;  %vm870_vm12 = vcmask 195584   ;;  %vm878_vm13 = vcmask 228352   ;;  %s2514_s11 = smov 64  }
   0xc   :  { %451 = vperm.xlu0 %2291, %v2560_v2   ;;  %157 = vperm.xlu1 %2278, %v2560_v2   ;;  %vm886_vm14 = vcmask 261120   ;;  %vm920_vm15 = vcmask 293888   ;;  %s2516_s19 = smov [#allocation2]  }
  0x12   :  { %2282 = vset.pattern.permute.xlu2 %v3638_v3 }
  0x13   :  { %212 = vperm.xlu2 %2282, %v2550_v0  }
  0x14   :  { %2296 = vset.pattern.permute.xlu0 %v3640_v4  ;;  %2281 = vset.pattern.permute.xlu1 %v3638_v3 }
  0x15   :  { %166 = vperm.xlu0 %2296, %v2577_v7   ;;  %209 = vperm.xlu1 %2281, %v2555_v1  }
  0x1b   :  { %2284 = vset.pattern.permute.xlu2 %v3637_v8 }
  0x1c   :  { %258 = vperm.xlu2 %2284, %v2555_v1  }
  0x1d   :  { %2305 = vset.pattern.permute.xlu0 %v3635_v9  ;;  %2283 = vset.pattern.permute.xlu1 %v3637_v8 }
  0x1e   :  { %411 = vperm.xlu0 %2305, %v2577_v7   ;;  %255 = vperm.xlu1 %2283, %v2560_v2  }
  0x24   :  { %2286 = vset.pattern.permute.xlu2 %v3636_v10 }
  0x25   :  { %306 = vperm.xlu2 %2286, %v2555_v1  }
  0x26   :  { %2306 = vset.pattern.permute.xlu0 %v3639_v5  ;;  %2285 = vset.pattern.permute.xlu1 %v3636_v10 }
  0x27   :  { %108 = vperm.xlu0 %2306, %v2560_v2   ;;  %303 = vperm.xlu1 %2285, %v2560_v2  }
  0x2d   :  { %2287 = vset.pattern.permute.xlu2 %v3634_v11 }
  0x2e   :  { %354 = vperm.xlu2 %2287, %v2560_v2  }
  0x2f   :  { %111 = vperm.xlu0 %2306, %v2555_v1   ;;  %309 = vperm.xlu1 %2285, %v2550_v0  }
  0x36   :  { %2289 = vset.pattern.permute.xlu2 %v3635_v9 }
  0x37   :  { %126 = vperm.xlu0 %2306, %v2603_v12   ;;  %2288 = vset.pattern.permute.xlu1 %v3634_v11 }
  0x38   :  { %402 = vperm.xlu2 %2289, %v2560_v2   ;;  %360 = vperm.xlu1 %2288, %v2550_v0  }
  0x3f   :  { %2311 = vset.pattern.permute.xlu0 %v3637_v8 }
  0x40   :  { %408 = vperm.xlu2 %2289, %v2550_v0   ;;  %261 = vperm.xlu0 %2311, %v2550_v0  }
  0x41   :  { %2290 = vset.pattern.permute.xlu1 %v3635_v9 }
  0x42   :  { %405 = vperm.xlu1 %2290, %v2555_v1  }
  0x48   :  { %2293 = vset.pattern.permute.xlu2 %v3644_v6  ;;  %267 = vperm.xlu0 %2311, %v2618_v13  }
  0x49   :  { %457 = vperm.xlu2 %2293, %v2550_v0  }
  0x4a   :  { %2292 = vset.pattern.permute.xlu1 %v3644_v6 }
  0x4b   :  { %454 = vperm.xlu1 %2292, %v2555_v1  }
  0x50   :  { %270 = vperm.xlu0 %2311, %v2628_v14  }
  0x51   :  { %2295 = vset.pattern.permute.xlu2 %v3639_v5 }
  0x52   :  { %120 = vperm.xlu2 %2295, %v2618_v13  }
  0x53   :  { %2294 = vset.pattern.permute.xlu1 %v3639_v5 }
  0x54   :  { %117 = vperm.xlu1 %2294, %v2577_v7  }
  0x58   :  { %2316 = vset.pattern.permute.xlu0 %v3634_v11 }
  0x59   :  { %357 = vperm.xlu0 %2316, %v2555_v1  }
  0x5a   :  { %2298 = vset.pattern.permute.xlu2 %v3638_v3 }
  0x5b   :  { %215 = vperm.xlu2 %2298, %v2577_v7  }
  0x5c   :  { %2297 = vset.pattern.permute.xlu1 %v3640_v4  ;;  %v2640_v15 = vpop.permute.xlu2 %160 }
  0x5d   :  { %169 = vperm.xlu1 %2297, %v2618_v13   ;;  %v179_v27 = vrot.slane %v2640_v15, 6 }
  0x61   :  { %372 = vperm.xlu0 %2316, %v2603_v12  }
  0x63   :  { %2300 = vset.pattern.permute.xlu2 %v3637_v8 }
  0x64   :  { %264 = vperm.xlu2 %2300, %v2577_v7   ;;  %v164_v16 = vpop.permute.xlu2 %163 }
  0x65   :  { %2299 = vset.pattern.permute.xlu1 %v3638_v3  ;;  %v181_v30 = vrot.slane %v164_v16, 6 }
  0x66   :  { %218 = vperm.xlu1 %2299, %v2618_v13  }
  0x67   :  { %v182_v33 = vsel %vm177_vm1, %v179_v27, %v181_v30 }
  0x68   :  { %v2709_v38 = vmul.f32 %v182_v33, %v2691_v32 }
  0x69   :  { %2325 = vset.pattern.permute.xlu0 %v2505_v44 }
  0x6a   :  { %v550_v42 = vrot.slane %v2709_v38, 2  ;;  %67 = vperm.xlu0 %2325, %v2560_v2  }
  0x6c   :  { %2302 = vset.pattern.permute.xlu2 %v3636_v10 }
  0x6d   :  { %315 = vperm.xlu2 %2302, %v2618_v13   ;;  %v2650_v17 = vpop.permute.xlu2 %212 }
  0x6e   :  { %2301 = vset.pattern.permute.xlu1 %v3636_v10 }
  0x6f   :  { %312 = vperm.xlu1 %2301, %v2577_v7  }
  0x75   :  { %v2654_v18 = vpop.permute.xlu1 %114  ;;  %2304 = vset.pattern.permute.xlu2 %v3634_v11  ;;  %v2657_v19 = vpop.permute.xlu0 %206 }
  0x76   :  { %366 = vperm.xlu2 %2304, %v2618_v13   ;;  %v2660_v20 = vpop.permute.xlu2 %258  ;;  %v3643_v33 = vrot.slane %v2654_v18, 7 }
  0x77   :  { %2303 = vset.pattern.permute.xlu1 %v3634_v11  ;;  %v276_v58 = vrot.slane %v2660_v20, 2 }
  0x78   :  { %363 = vperm.xlu1 %2303, %v2577_v7  }
  0x7e   :  { %2308 = vset.pattern.permute.xlu2 %v3644_v6  ;;  %v2665_v21 = vpop.permute.xlu1 %157  ;;  %v2667_v22 = vpop.permute.xlu0 %451 }
  0x7f   :  { %460 = vperm.xlu2 %2308, %v2577_v7   ;;  %v2679_v25 = vpop.permute.xlu2 %306 }
  0x80   :  { %2307 = vset.pattern.permute.xlu1 %v3635_v9 }
  0x81   :  { %414 = vperm.xlu1 %2307, %v2618_v13  }
  0x87   :  { %2310 = vset.pattern.permute.xlu2 %v3639_v5  ;;  %v2697_v34 = vpop.permute.xlu0 %166  ;;  %v2699_v35 = vpop.permute.xlu1 %209 }
  0x88   :  { %v183_v37 = vrot.slane %v2697_v34, 6  ;;  %123 = vperm.xlu2 %2310, %v2628_v14   ;;  %v2716_v40 = vpop.permute.xlu2 %354 }
  0x89   :  { %2309 = vset.pattern.permute.xlu1 %v3644_v6 }
  0x8a   :  { %v184_v39 = vsel %vm177_vm1, %v181_v30, %v183_v37  ;;  %463 = vperm.xlu1 %2309, %v2618_v13  }
  0x8b   :  { %v2719_v41 = vmul.f32 %v184_v39, %v2704_v36 }
  0x8d   :  { %v552_v43 = vrot.slane %v2719_v41, 2 }
  0x8f   :  { %v2729_v45 = vsel %vm43_vm0, %v550_v42, %v552_v43 }
  0x90   :  { %2313 = vset.pattern.permute.xlu2 %v3640_v4  ;;  %v256_v46 = vpop.permute.xlu1 %255  ;;  %v2732_v47 = vpop.permute.xlu0 %411 }
  0x91   :  { %175 = vperm.xlu2 %2313, %v2603_v12   ;;  %v275_v59 = vrot.slane %v256_v46, 2 }
  0x92   :  { %2312 = vset.pattern.permute.xlu1 %v3640_v4  ;;  %v2738_v48 = vpop.permute.xlu2 %402 }
  0x93   :  { %172 = vperm.xlu1 %2312, %v2628_v14   ;;  %v277_v61 = vsel %vm43_vm0, %v275_v59, %v276_v58  ;;  %v295_v2 = vmul.f32 %v275_v59, %v2770_v62  ;;  %v423_v39 = vrot.slane %v2738_v48, 5 }
  0x94   :  { %v296_v16 = vmul.f32 %v277_v61, %v2773_v63 }
  0x95   :  { %v629_v46 = vrot.slane %v295_v2, 6  ;;  %v227_v2 = vrot.slane %v2657_v19, 3  ;;  %v230_v19 = vrot.slane %v2650_v17, 3 }
  0x96   :  { %v630_v59 = vrot.slane %v296_v16, 6 }
  0x99   :  { %2315 = vset.pattern.permute.xlu2 %v3638_v3  ;;  %v109_v49 = vpop.permute.xlu0 %108  ;;  %v2741_v50 = vpop.permute.xlu1 %303 }
  0x9a   :  { %224 = vperm.xlu2 %2315, %v2603_v12   ;;  %v2746_v51 = vpop.permute.xlu2 %408  ;;  %v129_v20 = vrot.slane %v109_v49, 7 }
  0x9b   :  { %2314 = vset.pattern.permute.xlu1 %v3638_v3  ;;  %v3641_v55 = vrot.slane %v2746_v51, 5 }
  0x9c   :  { %221 = vperm.xlu1 %2314, %v2628_v14  }
  0xa1   :  { %v112_v52 = vpop.permute.xlu0 %111  ;;  %v2748_v53 = vpop.permute.xlu1 %309 }
  0xa2   :  { %2318 = vset.pattern.permute.xlu2 %v3636_v10  ;;  %v130_v23 = vrot.slane %v112_v52, 7 }
  0xa3   :  { %318 = vperm.xlu2 %2318, %v2628_v14   ;;  %v2754_v54 = vpop.permute.xlu2 %457 }
  0xa4   :  { %2317 = vset.pattern.permute.xlu1 %v3637_v8  ;;  %v131_v60 = vsel %vm128_vm3, %v129_v20, %v130_v23  ;;  %v133_v48 = vsel %vm128_vm3, %v130_v23, %v3643_v33 }
  0xa5   :  { %273 = vperm.xlu1 %2317, %v2603_v12   ;;  %v2814_v8 = vmul.f32 %v133_v48, %v2691_v32 }
  0xa9   :  { %v2759_v56 = vpop.permute.xlu0 %126 }
  0xaa   :  { %v2761_v57 = vpop.permute.xlu1 %360 }
  0xab   :  { %2320 = vset.pattern.permute.xlu2 %v3634_v11 }
  0xac   :  { %369 = vperm.xlu2 %2320, %v2628_v14   ;;  %v2777_v24 = vpop.permute.xlu2 %120 }
  0xad   :  { %2319 = vset.pattern.permute.xlu1 %v3636_v10  ;;  %v150_v10 = vmul.f32 %v131_v60, %v2773_v63 }
  0xae   :  { %321 = vperm.xlu1 %2319, %v2603_v12  }
  0xb2   :  { %v2779_v29 = vpop.permute.xlu0 %261 }
  0xb3   :  { %v3642_v30 = vrot.slane %v2779_v29, 2 }
  0xb4   :  { %v406_v28 = vpop.permute.xlu1 %405  ;;  %2322 = vset.pattern.permute.xlu2 %v3635_v9 }
  0xb5   :  { %v279_v49 = vsel %vm43_vm0, %v276_v58, %v3642_v30  ;;  %v424_v52 = vrot.slane %v406_v28, 5  ;;  %420 = vperm.xlu2 %2322, %v2603_v12   ;;  %v228_v28 = vrot.slane %v2699_v35, 3  ;;  %v631_v35 = vsel %vm177_vm1, %v629_v46, %v630_v59  ;;  %v2826_v48 = vpop.permute.xlu2 %215 }
  0xb6   :  { %v2795_v61 = vmul.f32 %v279_v49, %v2691_v32  ;;  %2321 = vset.pattern.permute.xlu1 %v3635_v9  ;;  %v149_v9 = vmul.f32 %v129_v20, %v2770_v62  ;;  %v507_v46 = vrot.slane %v150_v10, 1  ;;  %v509_v30 = vrot.slane %v2814_v8, 1 }
  0xb7   :  { %v425_v58 = vsel %vm422_vm2, %v423_v39, %v424_v52  ;;  %v427_v16 = vsel %vm422_vm2, %v424_v52, %v3641_v55  ;;  %417 = vperm.xlu1 %2321, %v2628_v14   ;;  %v443_v52 = vmul.f32 %v423_v39, %v2773_v63  ;;  %v229_v20 = vsel %vm226_vm4, %v227_v2, %v228_v28 }
  0xb8   :  { %v632_v23 = vrot.slane %v2795_v61, 6  ;;  %v444_v49 = vmul.f32 %v425_v58, %v2691_v32  ;;  %v2808_v11 = vmul.f32 %v427_v16, %v2704_v36  ;;  %v178_v16 = vrot.slane %v2665_v21, 6 }
  0xb9   :  { %v231_v39 = vsel %vm226_vm4, %v228_v28, %v230_v19  ;;  %v506_v55 = vrot.slane %v149_v9, 1  ;;  %v755_v21 = vrot.slane %v443_v52, 3  ;;  %v248_v9 = vmul.f32 %v229_v20, %v2773_v63 }
  0xba   :  { %v2817_v3 = vpop.permute.xlu0 %267  ;;  %v633_v58 = vsel %vm177_vm1, %v630_v59, %v632_v23  ;;  %v756_v4 = vrot.slane %v444_v49, 3  ;;  %v3646_v60 = vrot.slane %v2808_v11, 3  ;;  %v247_v59 = vmul.f32 %v227_v2, %v2770_v62 }
  0xbb   :  { %v2342_v5 = vpack.i.bf16 %v633_v58, %v631_v35  ;;  %v180_v28 = vsel %vm177_vm1, %v178_v16, %v179_v27  ;;  %v2844_v10 = vmul.f32 %v231_v39, %v2691_v32  ;;  %v508_v15 = vsel %vm323_vm5, %v506_v55, %v507_v46 }
  0xbc   :  { %v759_v2 = vsel %vm226_vm4, %v756_v4, %v3646_v60  ;;  %v510_v27 = vsel %vm323_vm5, %v507_v46, %v509_v30  ;;  %v198_v52 = vmul.f32 %v178_v16, %v2770_v62  ;;  %v199_v35 = vmul.f32 %v180_v28, %v2773_v63 }
  0xbd   :  { %v2832_v33 = vpop.permute.xlu1 %454  ;;  %2324 = vset.pattern.permute.xlu2 %v3644_v6  ;;  %2343 = vrot.lane.b32.xlu0 %v2342_v5, %s2506_s15  ;;  %v757_v5 = vsel %vm226_vm4, %v755_v21, %v756_v4  ;;  %v588_v20 = vrot.slane %v247_v59, 5  ;;  %v589_v39 = vrot.slane %v248_v9, 5  ;;  %v591_v21 = vrot.slane %v2844_v10, 5 }
  0xbe   :  { %469 = vperm.xlu2 %2324, %v2603_v12   ;;  %v2357_v58 = vpack.i.bf16 %v759_v2, %v757_v5  ;;  %v327_v4 = vrot.slane %v2748_v53, 1  ;;  %v2862_v55 = vpop.permute.xlu2 %264  ;;  %v547_v16 = vrot.slane %v198_v52, 2  ;;  %v548_v28 = vrot.slane %v199_v35, 2  ;;  %v2872_v5 = vld [vmem:[%s3628_s0 + $0x20] sm:$0xff]  ;;  %v27_v53 = vld [vmem:[%s3628_s0 + $0x28] sm:$0xff] }
  0xbf   :  { %2323 = vset.pattern.permute.xlu1 %v3644_v6  ;;  %v2327_v6 = vpack.i.bf16 %v510_v27, %v508_v15  ;;  %v325_v59 = vrot.slane %v2679_v25, 1  ;;  %v324_v9 = vrot.slane %v2741_v50, 1  ;;  %v590_v2 = vsel %vm422_vm2, %v588_v20, %v589_v39 }
  0xc0   :  { %466 = vperm.xlu1 %2323, %v2628_v14   ;;  %v374_v15 = vrot.slane %v2716_v40, 6  ;;  %v472_v50 = vrot.slane %v2667_v22, 4  ;;  %v51_v27 = vrot.slane %v2872_v5, 2  ;;  %v551_v40 = vsel %vm43_vm0, %v548_v28, %v550_v42 }
  0xc1   :  { %v328_v25 = vsel %vm323_vm5, %v325_v59, %v327_v4  ;;  %v232_v42 = vrot.slane %v2826_v48, 3  ;;  %v428_v61 = vrot.slane %v2732_v47, 5 }
  0xc2   :  { %v2855_v49 = vpop.permute.xlu0 %270  ;;  %v2893_v20 = vmul.f32 %v328_v25, %v2691_v32  ;;  %v394_v60 = vmul.f32 %v374_v15, %v2773_v63  ;;  %v2921_v48 = vsel %vm43_vm0, %v49_v31, %v51_v27 }
  0xc5   :  { %2358 = vrot.lane.b32.xlu0 %v2357_v58, %s2507_s16  ;;  %v549_v58 = vsel %vm43_vm0, %v547_v16, %v548_v28 }
  0xc6   :  { %v2864_v46 = vpop.permute.xlu1 %117  ;;  %2328 = vrot.lane.b32.xlu2 %v2327_v6, %s2508_s17  ;;  %v592_v6 = vsel %vm422_vm2, %v589_v39, %v591_v21  ;;  %v377_v39 = vrot.slane %v2761_v57, 6  ;;  %v2332_v25 = vpack.i.bf16 %v551_v40, %v549_v58  ;;  %v233_v40 = vsel %vm226_vm4, %v230_v19, %v232_v42 }
  0xc7   :  { %2367 = vset.pattern.permute.xlu2 %v2505_v44  ;;  %v2337_v35 = vpack.i.bf16 %v592_v6, %v590_v2  ;;  %v475_v2 = vrot.slane %v2754_v54, 4  ;;  %v2903_v16 = vpop.permute.xlu2 %315  ;;  %v3650_v57 = vrot.slane %v2746_v51, 5  ;;  %v140_v54 = vrot.slane %v2759_v56, 7 }
  0xc8   :  { %2326 = vset.pattern.permute.xlu1 %v2505_v44  ;;  %v326_v44 = vsel %vm323_vm5, %v324_v9, %v325_v59  ;;  %v345_v59 = vmul.f32 %v324_v9, %v2770_v62 }
  0xc9   :  { %72 = vperm.xlu1 %2326, %v2555_v1   ;;  %v473_v1 = vrot.slane %v2832_v33, 4  ;;  %v346_v38 = vmul.f32 %v326_v44, %v2773_v63 }
  0xca   :  { %v671_v26 = vrot.slane %v345_v59, 7 }
  0xcb   :  { %v358_v52 = vpop.permute.xlu0 %357  ;;  %v474_v44 = vsel %vm471_vm6, %v472_v50, %v473_v1  ;;  %v672_v31 = vrot.slane %v346_v38, 7  ;;  %v136_v38 = vrot.slane %v2777_v24, 7 }
  0xcc   :  { %v375_v22 = vrot.slane %v358_v52, 6 }
  0xcd   :  { %82 = vperm.xlu0 %2325, %v2577_v7  }
  0xce   :  { %v376_v28 = vsel %vm177_vm1, %v374_v15, %v375_v22  ;;  %v378_v33 = vsel %vm177_vm1, %v375_v22, %v377_v39  ;;  %2338 = vrot.lane.b32.xlu2 %v2337_v35, %s2509_s20  ;;  %v674_v15 = vrot.slane %v2893_v20, 7  ;;  %v714_v35 = vrot.slane %v394_v60, 2 }
  0xcf   :  { %v395_v9 = vmul.f32 %v376_v28, %v2691_v32  ;;  %v2912_v6 = vmul.f32 %v378_v33, %v2704_v36  ;;  %v2914_v7 = vpop.permute.xlu1 %169  ;;  %v476_v22 = vsel %vm471_vm6, %v473_v1, %v475_v2  ;;  %v493_v1 = vmul.f32 %v474_v44, %v2691_v32 }
  0xd0   :  { %v3647_v52 = vrot.slane %v2914_v7, 6  ;;  %v2948_v17 = vmul.f32 %v476_v22, %v2704_v36  ;;  %v675_v34 = vsel %vm128_vm3, %v672_v31, %v674_v15  ;;  %v673_v22 = vsel %vm128_vm3, %v671_v26, %v672_v31 }
  0xd1   :  { %v715_v28 = vrot.slane %v395_v9, 2  ;;  %v717_v58 = vrot.slane %v2912_v6, 2  ;;  %2333 = vrot.lane.b32.xlu1 %v2332_v25, %s2510_s21  ;;  %v134_v25 = vrot.slane %v2864_v46, 7  ;;  %v2966_v46 = vpop.permute.xlu2 %366 }
  0xd2   :  { %v186_v60 = vsel %vm177_vm1, %v183_v37, %v3647_v52  ;;  %v492_v37 = vmul.f32 %v472_v50, %v2773_v63 }
  0xd3   :  { %v2941_v33 = vmul.f32 %v186_v60, %v2921_v48  ;;  %v716_v9 = vsel %vm43_vm0, %v714_v35, %v715_v28  ;;  %v718_v59 = vsel %vm43_vm0, %v715_v28, %v717_v58  ;;  %v250_v35 = vmul.f32 %v233_v40, %v2704_v36 }
  0xd4   :  { %v2352_v19 = vpack.i.bf16 %v718_v59, %v716_v9  ;;  %v797_v28 = vrot.slane %v493_v1, 4  ;;  %v2347_v60 = vpack.i.bf16 %v675_v34, %v673_v22  ;;  %v799_v9 = vrot.slane %v2948_v17, 4 }
  0xd5   :  { %v554_v44 = vrot.slane %v2941_v33, 2  ;;  %v796_v52 = vrot.slane %v492_v37, 4  ;;  %v137_v31 = vsel %vm128_vm3, %v134_v25, %v136_v38  ;;  %v282_v1 = vrot.slane %v2817_v3, 2 }
  0xd6   :  { %2353 = vrot.lane.b32.xlu2 %v2352_v19, %s2511_s22  ;;  %v3648_v19 = vrot.slane %v2654_v18, 7  ;;  %v280_v34 = vrot.slane %v2862_v55, 2  ;;  %v3652_v17 = vrot.slane %v2914_v7, 6 }
  0xd7   :  { %v555_v50 = vsel %vm43_vm0, %v552_v43, %v554_v44  ;;  %v593_v43 = vrot.slane %v250_v35, 5  ;;  %v800_v35 = vsel %vm471_vm6, %v797_v28, %v799_v9 }
  0xd8   :  { %v2968_v59 = vpop.permute.xlu1 %218  ;;  %v2373_v40 = vpack.i.bf16 %v555_v50, %v2729_v45  ;;  %v135_v26 = vsel %vm128_vm3, %v3648_v19, %v134_v25  ;;  %v798_v45 = vsel %vm471_vm6, %v796_v52, %v797_v28  ;;  %v2987_v25 = vmul.f32 %v137_v31, %v2921_v48 }
  0xd9   :  { %v234_v41 = vrot.slane %v2968_v59, 3  ;;  %2348 = vrot.lane.b32.xlu1 %v2347_v60, %s2512_s23  ;;  %v152_v37 = vmul.f32 %v135_v26, %v2704_v36  ;;  %v283_v60 = vsel %vm43_vm0, %v280_v34, %v282_v1  ;;  %v2362_v50 = vpack.i.bf16 %v800_v35, %v798_v45 }
  0xda   :  { %v594_v19 = vsel %vm422_vm2, %v591_v21, %v593_v43  ;;  %v513_v28 = vrot.slane %v2987_v25, 1  ;;  %v331_v31 = vrot.slane %v2903_v16, 1  ;;  %v3016_v21 = vmul.f32 %v283_v60, %v2921_v48 }
  0xdb   :  { %v235_v18 = vsel %vm226_vm4, %v232_v42, %v234_v41  ;;  %v3649_v42 = vrot.slane %v2779_v29, 2  ;;  %v511_v26 = vrot.slane %v152_v37, 1  ;;  %v3654_v25 = vmov 1  }
  0xdc   :  { %v2990_v22 = vmul.f32 %v235_v18, %v2921_v48 }
  0xdd   :  { %v281_v52 = vsel %vm43_vm0, %v3649_v42, %v280_v34  ;;  %v3012_v34 = vpop.permute.xlu2 %460  ;;  %v512_v35 = vsel %vm323_vm5, %v509_v30, %v511_v26  ;;  %v514_v42 = vsel %vm323_vm5, %v511_v26, %v513_v28  ;;  %v381_v26 = vrot.slane %v2966_v46, 6 }
  0xde   :  { %v595_v55 = vrot.slane %v2990_v22, 5  ;;  %77 = vperm.xlu2 %2367, %v2550_v0   ;;  %v298_v10 = vmul.f32 %v281_v52, %v2704_v36  ;;  %v477_v51 = vrot.slane %v3012_v34, 4 }
  0xe0   :  { %v596_v0 = vsel %vm422_vm2, %v593_v43, %v595_v55  ;;  %v634_v30 = vrot.slane %v298_v10, 6 }
  0xe1   :  { %v313_v29 = vpop.permute.xlu1 %312  ;;  %2363 = vrot.lane.b32.xlu1 %v2362_v50, %s2513_s24  ;;  %v2378_v18 = vpack.i.bf16 %v596_v0, %v594_v19  ;;  %v2368_v50 = vpack.i.bf16 %v514_v42, %v512_v35  ;;  %v636_v19 = vrot.slane %v3016_v21, 6  ;;  %v53_v0 = vrot.slane %v27_v53, 2 }
  0xe2   :  { %v329_v45 = vrot.slane %v313_v29, 1  ;;  %v635_v10 = vsel %vm177_vm1, %v632_v23, %v634_v30 }
  0xe3   :  { %2379 = vrot.lane.b32.xlu0 %v2378_v18, %s2509_s20  ;;  %v637_v35 = vsel %vm177_vm1, %v634_v30, %v636_v19  ;;  %v3058_v20 = vsel %vm43_vm0, %v51_v27, %v53_v0 }
  0xe4   :  { %v330_v37 = vsel %vm323_vm5, %v327_v4, %v329_v45  ;;  %v332_v43 = vsel %vm323_vm5, %v329_v45, %v331_v31  ;;  %v2383_v5 = vpack.i.bf16 %v637_v35, %v635_v10  ;;  %v478_v10 = vsel %vm471_vm6, %v475_v2, %v477_v51 }
  0xe5   :  { %v348_v52 = vmul.f32 %v330_v37, %v2704_v36  ;;  %v3033_v60 = vmul.f32 %v332_v43, %v2921_v48  ;;  %v124_v37 = vpop.permute.xlu2 %123 }
  0xe6   :  { %2374 = vrot.lane.b32.xlu2 %v2373_v40, %s2510_s21  ;;  %v138_v35 = vrot.slane %v124_v37, 7 }
  0xe7   :  { %v676_v4 = vrot.slane %v348_v52, 7  ;;  %v678_v8 = vrot.slane %v3033_v60, 7 }
  0xe9   :  { %2369 = vrot.lane.b32.xlu1 %v2368_v50, %s2508_s17  ;;  %v677_v29 = vsel %vm128_vm3, %v674_v15, %v676_v4  ;;  %v679_v40 = vsel %vm128_vm3, %v676_v4, %v678_v8 }
  0xea   :  { %v364_v18 = vpop.permute.xlu1 %363  ;;  %v2388_v43 = vpack.i.bf16 %v679_v40, %v677_v29 }
  0xeb   :  { %v379_v45 = vrot.slane %v364_v18, 6 }
  0xed   :  { %v380_v15 = vsel %vm177_vm1, %v377_v39, %v379_v45  ;;  %v382_v42 = vsel %vm177_vm1, %v379_v45, %v381_v26  ;;  %v429_v39 = vsel %vm422_vm2, %v3650_v57, %v428_v61  ;;  %v176_v29 = vpop.permute.xlu2 %175  ;;  %v28_v45 = vld [vmem:[%s3628_s0 + $0x30] sm:$0x3] }
  0xee   :  { %v397_v23 = vmul.f32 %v380_v15, %v2921_v48  ;;  %v3069_v52 = vmul.f32 %v382_v42, %v3058_v20  ;;  %2389 = vrot.lane.b32.xlu2 %v2388_v43, %s2512_s23  ;;  %v446_v18 = vmul.f32 %v429_v39, %v2921_v48  ;;  %v3651_v15 = vrot.slane %v2808_v11, 3 }
  0xef   :  { %v139_v11 = vsel %vm128_vm3, %v136_v38, %v138_v35  ;;  %v141_v39 = vsel %vm128_vm3, %v138_v35, %v140_v54  ;;  %v189_v38 = vrot.slane %v176_v29, 6 }
  0xf0   :  { %v719_v27 = vrot.slane %v397_v23, 2  ;;  %v721_v53 = vrot.slane %v3069_v52, 2  ;;  %v760_v43 = vrot.slane %v446_v18, 3  ;;  %v55_v23 = vrot.slane %v28_v45, 2  ;;  %v898_v52 = vld [vmem:[%s3631_s3 + $0x130] sm:$0x3] }
  0xf1   :  { %2384 = vrot.lane.b32.xlu1 %v2383_v5, %s2506_s15  ;;  %v495_v5 = vmul.f32 %v478_v10, %v2921_v48 }
  0xf2   :  { %v720_v47 = vsel %vm43_vm0, %v717_v58, %v719_v27  ;;  %v722_v4 = vsel %vm43_vm0, %v719_v27, %v721_v53  ;;  %v761_v42 = vsel %vm226_vm4, %v3651_v15, %v760_v43 }
  0xf3   :  { %v3083_v50 = vpop.permute.xlu1 %414  ;;  %v2393_v30 = vpack.i.bf16 %v722_v4, %v720_v47  ;;  %v3123_v4 = vsel %vm43_vm0, %v53_v0, %v55_v23  ;;  %v801_v56 = vrot.slane %v495_v5, 4 }
  0xf4   :  { %v430_v40 = vrot.slane %v3083_v50, 5  ;;  %v155_v24 = vmul.f32 %v141_v39, %v3123_v4 }
  0xf5   :  { %2394 = vrot.lane.b32.xlu0 %v2393_v30, %s2511_s22  ;;  %v225_v37 = vpop.permute.xlu2 %224 }
  0xf6   :  { %v431_v6 = vsel %vm422_vm2, %v428_v61, %v430_v40  ;;  %v517_v35 = vrot.slane %v155_v24, 1 }
  0xf7   :  { %v3093_v58 = vmul.f32 %v431_v6, %v3058_v20  ;;  %v802_v6 = vsel %vm471_vm6, %v799_v9, %v801_v56 }
  0xf9   :  { %v762_v34 = vrot.slane %v3093_v58, 3 }
  0xfb   :  { %v763_v61 = vsel %vm226_vm4, %v760_v43, %v762_v34 }
  0xfc   :  { %v3109_v27 = vpop.permute.xlu1 %463  ;;  %v2398_v57 = vpack.i.bf16 %v763_v61, %v761_v42 }
  0xfd   :  { %v479_v2 = vrot.slane %v3109_v27, 4  ;;  %87 = vperm.xlu0 %2325, %v2618_v13   ;;  %v154_v13 = vmul.f32 %v139_v11, %v3058_v20  ;;  %v3140_v29 = vpop.permute.xlu2 %318 }
  0xfe   :  { %2399 = vrot.lane.b32.xlu1 %v2398_v57, %s2507_s16  ;;  %v238_v57 = vrot.slane %v225_v37, 3  ;;  %v284_v37 = vrot.slane %v2855_v49, 2  ;;  %v333_v3 = vrot.slane %v3140_v29, 1 }
  0xff   :  { %v480_v47 = vsel %vm471_vm6, %v477_v51, %v479_v2  ;;  %v515_v43 = vrot.slane %v154_v13, 1 }
 0x100   :  { %v3126_v30 = vmul.f32 %v480_v47, %v3058_v20  ;;  %v334_v29 = vsel %vm323_vm5, %v331_v31, %v333_v3 }
 0x101   :  { %v516_v61 = vsel %vm323_vm5, %v513_v28, %v515_v43 }
 0x102   :  { %v803_v18 = vrot.slane %v3126_v30, 4 }
 0x104   :  { %v804_v0 = vsel %vm471_vm6, %v801_v56, %v803_v18  ;;  %v3653_v56 = vmov 2  }
 0x105   :  { %v173_v51 = vpop.permute.xlu1 %172  ;;  %97 = vperm.xlu0 %2325, %v2603_v12   ;;  %v2403_v45 = vpack.i.bf16 %v804_v0, %v802_v6  ;;  %v285_v6 = vsel %vm43_vm0, %v282_v1, %v284_v37  ;;  %v373_v0 = vpop.permute.xlu0 %372 }
 0x106   :  { %v187_v10 = vrot.slane %v173_v51, 6  ;;  %92 = vperm.xlu1 %2326, %v2628_v14   ;;  %v518_v14 = vsel %vm323_vm5, %v515_v43, %v517_v35  ;;  %v370_v13 = vpop.permute.xlu2 %369  ;;  %v300_v43 = vmul.f32 %v285_v6, %v3058_v20 }
 0x107   :  { %2404 = vrot.lane.b32.xlu2 %v2403_v45, %s2513_s24  ;;  %v2408_v7 = vpack.i.bf16 %v518_v14, %v516_v61  ;;  %v383_v45 = vrot.slane %v370_v13, 6 }
 0x108   :  { %v188_v9 = vsel %vm177_vm1, %v3652_v17, %v187_v10  ;;  %v190_v15 = vsel %vm177_vm1, %v187_v10, %v189_v38  ;;  %v385_v10 = vrot.slane %v373_v0, 6 }
 0x109   :  { %v203_v42 = vmul.f32 %v188_v9, %v3058_v20  ;;  %v204_v12 = vmul.f32 %v190_v15, %v3123_v4  ;;  %v384_v1 = vsel %vm177_vm1, %v381_v26, %v383_v45 }
 0x10a   :  { %v386_v15 = vsel %vm177_vm1, %v383_v45, %v385_v10 }
 0x10b   :  { %v556_v23 = vrot.slane %v203_v42, 2  ;;  %v558_v5 = vrot.slane %v204_v12, 2  ;;  %v399_v12 = vmul.f32 %v384_v1, %v3123_v4  ;;  %v3185_v61 = vmul.f32 0.0, %v386_v15  ;;  %v2204_v15 = vld [vmem:[%s3631_s3 + $0x120] sm:$0xff] }
 0x10d   :  { %531 = vrot.lane.b32.xlu0 %v517_v35, %s2508_s17  ;;  %v557_v54 = vsel %vm43_vm0, %v554_v44, %v556_v23  ;;  %v559_v11 = vsel %vm43_vm0, %v556_v23, %v558_v5  ;;  %v350_v23 = vmul.f32 %v334_v29, %v3058_v20 }
 0x10e   :  { %v222_v39 = vpop.permute.xlu1 %221  ;;  %v2413_v47 = vpack.i.bf16 %v559_v11, %v557_v54  ;;  %2449 = vset.pattern.permute.xlu1 %v3653_v56  ;;  %2448 = vset.pattern.permute.xlu0 %v3654_v25 }
 0x10f   :  { %v236_v28 = vrot.slane %v222_v39, 3  ;;  %2409 = vrot.lane.b32.xlu2 %v2408_v7, %s2508_s17  ;;  %v725_v7 = vrot.slane %v3185_v61, 2  ;;  %v421_v39 = vpop.permute.xlu2 %420  ;;  %v680_v31 = vrot.slane %v350_v23, 7 }
 0x110   :  { %2414 = vrot.lane.b32.xlu1 %v2413_v47, %s2510_s21 }
 0x111   :  { %v237_v33 = vsel %vm226_vm4, %v234_v41, %v236_v28  ;;  %v239_v44 = vsel %vm226_vm4, %v236_v28, %v238_v57  ;;  %v723_v57 = vrot.slane %v399_v12, 2 }
 0x112   :  { %v252_v24 = vmul.f32 %v237_v33, %v3058_v20  ;;  %v253_v38 = vmul.f32 %v239_v44, %v3123_v4 }
 0x113   :  { %v726_v56 = vsel %vm43_vm0, %v723_v57, %v725_v7 }
 0x114   :  { %v597_v51 = vrot.slane %v252_v24, 5  ;;  %v599_v49 = vrot.slane %v253_v38, 5  ;;  %v914_v38 = vunpack.c.l.b16 %v898_v52 }
 0x116   :  { %v598_v59 = vsel %vm422_vm2, %v595_v55, %v597_v51  ;;  %v600_v41 = vsel %vm422_vm2, %v597_v51, %v599_v49  ;;  %v638_v55 = vrot.slane %v300_v43, 6  ;;  %v917_v51 = vpack.c.b16 %v914_v38, %v914_v38 }
 0x117   :  { %v274_v35 = vpop.permute.xlu1 %273  ;;  %v2418_v17 = vpack.i.bf16 %v600_v41, %v598_v59 }
 0x118   :  { %v286_v9 = vrot.slane %v274_v35, 2  ;;  %v639_v26 = vsel %vm177_vm1, %v636_v19, %v638_v55  ;;  %v724_v19 = vsel %vm43_vm0, %v721_v53, %v723_v57  ;;  %v470_v6 = vpop.permute.xlu2 %469  ;;  %v934_v41 = vsel %vm177_vm1, %v917_v51, 0 }
 0x119   :  { %2419 = vrot.lane.b32.xlu2 %v2418_v17, %s2509_s20  ;;  %v2433_v28 = vpack.i.bf16 %v726_v56, %v724_v19  ;;  %941 = vmatpush.bf16.msra.mxu0 %v934_v41  ;;  %v483_v35 = vrot.slane %v470_v6, 4 }
 0x11a   :  { %v287_v22 = vsel %vm43_vm0, %v284_v37, %v286_v9  ;;  %v434_v37 = vrot.slane %v421_v39, 5  ;;  %2254 = vmatpush.bf16.msra.mxu2 %v934_v41 }
 0x11b   :  { %v301_v42 = vmul.f32 %v287_v22, %v3123_v4 }
 0x11d   :  { %v640_v46 = vrot.slane %v301_v42, 6 }
 0x11f   :  { %v641_v14 = vsel %vm177_vm1, %v638_v55, %v640_v46 }
 0x120   :  { %v322_v54 = vpop.permute.xlu1 %321  ;;  %v2423_v11 = vpack.i.bf16 %v641_v14, %v639_v26  ;;  %v2329_v22 = vpop.permute.xlu2 %2328 }
 0x121   :  { %v335_v47 = vrot.slane %v322_v54, 1  ;;  %572 = vrot.lane.b32.xlu2 %v558_v5, %s2510_s21  ;;  %v681_v5 = vsel %vm128_vm3, %v678_v8, %v680_v31  ;;  %v2330_v54 = vunpack.i.l.bf16 %v2329_v22 }
 0x122   :  { %2424 = vrot.lane.b32.xlu1 %v2423_v11, %s2506_s15 }
 0x123   :  { %v336_v16 = vsel %vm323_vm5, %v333_v3, %v335_v47  ;;  %v352_v33 = vmul.f32 0.0, %v335_v47  ;;  %v2331_v47 = vunpack.i.h.bf16 %v2329_v22 }
 0x124   :  { %v351_v21 = vmul.f32 %v336_v16, %v3123_v4 }
 0x125   :  { %v684_v60 = vrot.slane %v352_v33, 7 }
 0x126   :  { %v682_v25 = vrot.slane %v351_v21, 7 }
 0x128   :  { %v683_v44 = vsel %vm128_vm3, %v680_v31, %v682_v25  ;;  %v685_v50 = vsel %vm128_vm3, %v682_v25, %v684_v60  ;;  %v2339_v23 = vpop.permute.xlu2 %2338 }
 0x129   :  { %v418_v13 = vpop.permute.xlu1 %417  ;;  %2434 = vrot.lane.b32.xlu2 %v2433_v28, %s2511_s22  ;;  %v2428_v53 = vpack.i.bf16 %v683_v44, %v681_v5  ;;  %v2341_v21 = vunpack.i.h.bf16 %v2339_v23 }
 0x12a   :  { %v432_v24 = vrot.slane %v418_v13, 5  ;;  %613 = vrot.lane.b32.xlu1 %v599_v49, %s2509_s20  ;;  %v2205_v49 = vld [vmem:[%s3631_s3 + $0x128] sm:$0xff]  ;;  %s1978_s20 = sshll.u32 %s2516_s19, 4  ;;  %s1979_s20 = int_to_ptr.vmem [resolvable:$true] %s1978_s20 }
 0x12b   :  { %2429 = vrot.lane.b32.xlu0 %v2428_v53, %s2512_s23  ;;  %942 = vmatpush.bf16.msra.mxu0 %v2205_v49 }
 0x12c   :  { %v433_v8 = vsel %vm422_vm2, %v430_v40, %v432_v24  ;;  %v435_v0 = vsel %vm422_vm2, %v432_v24, %v434_v37  ;;  %2255 = vmatpush.bf16.msra.mxu2 %v2205_v49 }
 0x12d   :  { %v448_v45 = vmul.f32 %v433_v8, %v3123_v4  ;;  %v449_v59 = vmul.f32 0.0, %v435_v0 }
 0x12f   :  { %v764_v43 = vrot.slane %v448_v45, 3  ;;  %v766_v10 = vrot.slane %v449_v59, 3  ;;  %943 = vmatpush.bf16.msra.mxu0 %v2204_v15 }
 0x130   :  { %2256 = vmatpush.bf16.msra.mxu2 %v2204_v15  ;;  %v2354_v19 = vpop.permute.xlu2 %2353 }
 0x131   :  { %698 = vrot.lane.b32.xlu2 %v685_v50, %s2512_s23  ;;  %v765_v40 = vsel %vm226_vm4, %v762_v34, %v764_v43  ;;  %v767_v17 = vsel %vm226_vm4, %v764_v43, %v766_v10  ;;  %v2356_v38 = vunpack.i.h.bf16 %v2354_v19  ;;  %v2355_v6 = vunpack.i.l.bf16 %v2354_v19 }
 0x132   :  { %v467_v9 = vpop.permute.xlu1 %466  ;;  %v2438_v3 = vpack.i.bf16 %v767_v17, %v765_v40 }
 0x133   :  { %v481_v1 = vrot.slane %v467_v9, 4  ;;  %654 = vrot.lane.b32.xlu0 %v640_v46, %s2506_s15 }
 0x134   :  { %2439 = vrot.lane.b32.xlu1 %v2438_v3, %s2507_s16 }
 0x135   :  { %v482_v58 = vsel %vm471_vm6, %v479_v2, %v481_v1  ;;  %v484_v34 = vsel %vm471_vm6, %v481_v1, %v483_v35  ;;  %v68_v2 = vpop.permute.xlu0 %67 }
 0x136   :  { %v497_v55 = vmul.f32 %v482_v58, %v3123_v4  ;;  %v498_v42 = vmul.f32 0.0, %v484_v34  ;;  %v100_v57 = vmul.f32 %v68_v2, %v2770_v62 }
 0x138   :  { %v805_v12 = vrot.slane %v497_v55, 4  ;;  %v807_v29 = vrot.slane %v498_v42, 4  ;;  %v831_v61 = vsel %vm830_vm7, %v100_v57, %v2330_v54  ;;  %v78_v59 = vpop.permute.xlu2 %77 }
 0x139   :  { %780 = vrot.lane.b32.xlu2 %v766_v10, %s2507_s16  ;;  %v102_v15 = vmul.f32 %v78_v59, %v2691_v32 }
 0x13a   :  { %v806_v46 = vsel %vm471_vm6, %v803_v18, %v805_v12  ;;  %v808_v26 = vsel %vm471_vm6, %v805_v12, %v807_v29 }
 0x13b   :  { %v73_v27 = vpop.permute.xlu1 %72  ;;  %v2443_v14 = vpack.i.bf16 %v808_v26, %v806_v46 }
 0x13c   :  { %739 = vrot.lane.b32.xlu1 %v725_v7, %s2511_s22  ;;  %v101_v11 = vmul.f32 %v73_v27, %v2773_v63  ;;  %v2340_v63 = vunpack.i.l.bf16 %v2339_v23 }
 0x13d   :  { %2444 = vrot.lane.b32.xlu0 %v2443_v14, %s2513_s24  ;;  %v2344_v16 = vpop.permute.xlu0 %2343 }
 0x13e   :  { %v832_v7 = vsel %vm830_vm7, %v101_v11, %v2331_v47  ;;  %v2346_v37 = vunpack.i.h.bf16 %v2344_v16  ;;  %v2345_v33 = vunpack.i.l.bf16 %v2344_v16 }
 0x140   :  { %v2375_v3 = vpop.permute.xlu2 %2374 }
 0x141   :  { %v2377_v26 = vunpack.i.h.bf16 %v2375_v3  ;;  %v2376_v27 = vunpack.i.l.bf16 %v2375_v3 }
 0x143   :  { %v2334_v30 = vpop.permute.xlu1 %2333 }
 0x144   :  { %v2336_v18 = vunpack.i.h.bf16 %v2334_v30  ;;  %v2335_v39 = vunpack.i.l.bf16 %v2334_v30 }
 0x145   :  { %821 = vrot.lane.b32.xlu0 %v807_v29, %s2513_s24  ;;  %v2359_v60 = vpop.permute.xlu0 %2358 }
 0x146   :  { %v839_v31 = vsel %vm838_vm8, %v831_v61, %v2335_v39  ;;  %v840_v62 = vsel %vm838_vm8, %v832_v7, %v2336_v18  ;;  %v2361_v51 = vunpack.i.h.bf16 %v2359_v60  ;;  %v2360_v45 = vunpack.i.l.bf16 %v2359_v60 }
 0x147   :  { %v847_v56 = vsel %vm846_vm9, %v839_v31, %v2340_v63  ;;  %v848_v25 = vsel %vm846_vm9, %v840_v62, %v2341_v21 }
 0x148   :  { %v855_v52 = vsel %vm854_vm10, %v847_v56, %v2345_v33  ;;  %v856_v13 = vsel %vm854_vm10, %v848_v25, %v2346_v37  ;;  %v2390_v42 = vpop.permute.xlu2 %2389 }
 0x149   :  { %v2392_v61 = vunpack.i.h.bf16 %v2390_v42  ;;  %v2391_v7 = vunpack.i.l.bf16 %v2390_v42 }
 0x14b   :  { %v2349_v28 = vpop.permute.xlu1 %2348 }
 0x14c   :  { %v2351_v5 = vunpack.i.h.bf16 %v2349_v28  ;;  %v2350_v44 = vunpack.i.l.bf16 %v2349_v28 }
 0x14d   :  { %v83_v9 = vpop.permute.xlu0 %82 }
 0x14e   :  { %v863_v53 = vsel %vm862_vm11, %v855_v52, %v2350_v44  ;;  %v864_v24 = vsel %vm862_vm11, %v856_v13, %v2351_v5  ;;  %v103_v55 = vmul.f32 %v83_v9, %v2704_v36 }
 0x14f   :  { %v871_v8 = vsel %vm870_vm12, %v863_v53, %v2355_v6  ;;  %v872_v0 = vsel %vm870_vm12, %v864_v24, %v2356_v38 }
 0x150   :  { %v879_v49 = vsel %vm878_vm13, %v871_v8, %v2360_v45  ;;  %v880_v50 = vsel %vm878_vm13, %v872_v0, %v2361_v51 }
 0x153   :  { %v2364_v41 = vpop.permute.xlu1 %2363 }
 0x154   :  { %v2366_v43 = vunpack.i.h.bf16 %v2364_v41  ;;  %v2365_v10 = vunpack.i.l.bf16 %v2364_v41 }
 0x155   :  { %v2380_v22 = vpop.permute.xlu0 %2379 }
 0x156   :  { %v887_v35 = vsel %vm886_vm14, %v879_v49, %v2365_v10  ;;  %v888_v40 = vsel %vm886_vm14, %v880_v50, %v2366_v43  ;;  %v2382_v32 = vunpack.i.h.bf16 %v2380_v22  ;;  %v2381_v54 = vunpack.i.l.bf16 %v2380_v22 }
 0x157   :  { %v899_v17 = vpack.c.bf16 %v888_v40, %v887_v35 }
 0x159   :  { %1997 = vmatmul.msk.bf16.vlgmr.msra.gmra.mxu0 %vm920_vm15, %v899_v17 }
 0x15b   :  { %v2370_v1 = vpop.permute.xlu1 %2369 }
 0x15c   :  { %v2372_v58 = vunpack.i.h.bf16 %v2370_v1  ;;  %v2371_v34 = vunpack.i.l.bf16 %v2370_v1 }
 0x15e   :  { %v834_v12 = vsel %vm830_vm7, %v103_v55, %v2372_v58  ;;  %v833_v29 = vsel %vm830_vm7, %v102_v15, %v2371_v34 }
 0x15f   :  { %v841_v14 = vsel %vm838_vm8, %v833_v29, %v2376_v27  ;;  %v842_v2 = vsel %vm838_vm8, %v834_v12, %v2377_v26 }
 0x160   :  { %v849_v30 = vsel %vm846_vm9, %v841_v14, %v2381_v54  ;;  %v850_v36 = vsel %vm846_vm9, %v842_v2, %v2382_v32 }
 0x161   :  { %v2405_v31 = vpop.permute.xlu2 %2404 }
 0x162   :  { %v2407_v25 = vunpack.i.h.bf16 %v2405_v31  ;;  %v2406_v28 = vunpack.i.l.bf16 %v2405_v31 }
 0x163   :  { %v2385_v46 = vpop.permute.xlu1 %2384 }
 0x164   :  { %v2387_v23 = vunpack.i.h.bf16 %v2385_v46  ;;  %v2386_v57 = vunpack.i.l.bf16 %v2385_v46 }
 0x166   :  { %v857_v18 = vsel %vm854_vm10, %v849_v30, %v2386_v57  ;;  %v858_v39 = vsel %vm854_vm10, %v850_v36, %v2387_v23 }
 0x167   :  { %v2395_v11 = vpop.permute.xlu0 %2394  ;;  %v865_v21 = vsel %vm862_vm11, %v857_v18, %v2391_v7  ;;  %v866_v63 = vsel %vm862_vm11, %v858_v39, %v2392_v61 }
 0x168   :  { %v2397_v47 = vunpack.i.h.bf16 %v2395_v11  ;;  %v2396_v16 = vunpack.i.l.bf16 %v2395_v11 }
 0x169   :  { %v2410_v6 = vpop.permute.xlu2 %2409 }
 0x16a   :  { %v873_v37 = vsel %vm870_vm12, %v865_v21, %v2396_v16  ;;  %v874_v33 = vsel %vm870_vm12, %v866_v63, %v2397_v47  ;;  %v2411_v40 = vunpack.i.l.bf16 %v2410_v6  ;;  %v2412_v9 = vunpack.i.h.bf16 %v2410_v6 }
 0x16f   :  { %v88_v24 = vpop.permute.xlu0 %87 }
 0x170   :  { %v2400_v62 = vpop.permute.xlu1 %2399  ;;  %v104_v10 = vmul.f32 %v88_v24, %v2921_v48  ;;  %v2457_v24 = vld [vmem:[%s3630_s2] ss:$0 sm:$0xff] }
 0x171   :  { %v2402_v19 = vunpack.i.h.bf16 %v2400_v62  ;;  %v2401_v56 = vunpack.i.l.bf16 %v2400_v62 }
 0x172   :  { %v835_v3 = vsel %vm830_vm7, %v104_v10, %v2411_v40 }
 0x173   :  { %v881_v5 = vsel %vm878_vm13, %v873_v37, %v2401_v56  ;;  %v882_v44 = vsel %vm878_vm13, %v874_v33, %v2402_v19  ;;  %v2420_v0 = vpop.permute.xlu2 %2419 }
 0x174   :  { %v889_v52 = vsel %vm886_vm14, %v881_v5, %v2406_v28  ;;  %v890_v13 = vsel %vm886_vm14, %v882_v44, %v2407_v25  ;;  %v2421_v55 = vunpack.i.l.bf16 %v2420_v0  ;;  %v2422_v29 = vunpack.i.h.bf16 %v2420_v0 }
 0x175   :  { %v900_v53 = vpack.c.bf16 %v890_v13, %v889_v52 }
 0x177   :  { %1998 = vmatmul.msk.bf16.gmra.mxu0 %vm920_vm15, %v900_v53  ;;  %v98_v60 = vpop.permute.xlu0 %97 }
 0x178   :  { %v93_v38 = vpop.permute.xlu1 %92 }
 0x179   :  { %v105_v50 = vmul.f32 %v93_v38, %v3058_v20  ;;  %v106_v20 = vmul.f32 %v98_v60, %v3123_v4 }
 0x17b   :  { %v573_v59 = vpop.permute.xlu2 %572  ;;  %v836_v1 = vsel %vm830_vm7, %v105_v50, %v2412_v9 }
 0x17f   :  { %v532_v51 = vpop.permute.xlu0 %531 }
 0x180   :  { %v837_v27 = vsel %vm830_vm7, %v106_v20, %v532_v51  ;;  %vm1001_vm7 = vcmask 523264  }
 0x181   :  { %v845_v18 = vsel %vm838_vm8, %v837_v27, %v573_v59 }
 0x182   :  { %v2415_v8 = vpop.permute.xlu1 %2414 }
 0x183   :  { %v2435_v49 = vpop.permute.xlu2 %2434  ;;  %v2416_v35 = vunpack.i.l.bf16 %v2415_v8  ;;  %v2417_v17 = vunpack.i.h.bf16 %v2415_v8 }
 0x184   :  { %v2436_v54 = vunpack.i.l.bf16 %v2435_v49  ;;  %v2437_v4 = vunpack.i.h.bf16 %v2435_v49 }
 0x185   :  { %v843_v15 = vsel %vm838_vm8, %v835_v3, %v2416_v35  ;;  %v844_v42 = vsel %vm838_vm8, %v836_v1, %v2417_v17 }
 0x186   :  { %v851_v26 = vsel %vm846_vm9, %v843_v15, %v2421_v55  ;;  %v852_v14 = vsel %vm846_vm9, %v844_v42, %v2422_v29 }
 0x18b   :  { %v699_v23 = vpop.permute.xlu2 %698 }
 0x193   :  { %v781_v5 = vpop.permute.xlu2 %780 }
 0x194   :  { %v2425_v45 = vpop.permute.xlu1 %2424 }
 0x195   :  { %v2426_v22 = vunpack.i.l.bf16 %v2425_v45  ;;  %v2427_v48 = vunpack.i.h.bf16 %v2425_v45 }
 0x197   :  { %v859_v2 = vsel %vm854_vm10, %v851_v26, %v2426_v22  ;;  %v860_v57 = vsel %vm854_vm10, %v852_v14, %v2427_v48 }
 0x19c   :  { %v614_v43 = vpop.permute.xlu1 %613 }
 0x19d   :  { %v2430_v41 = vpop.permute.xlu0 %2429  ;;  %v853_v39 = vsel %vm846_vm9, %v845_v18, %v614_v43 }
 0x19e   :  { %v2431_v12 = vunpack.i.l.bf16 %v2430_v41  ;;  %v2432_v46 = vunpack.i.h.bf16 %v2430_v41 }
 0x1a0   :  { %v867_v32 = vsel %vm862_vm11, %v859_v2, %v2431_v12  ;;  %v868_v11 = vsel %vm862_vm11, %v860_v57, %v2432_v46 }
 0x1a1   :  { %v875_v47 = vsel %vm870_vm12, %v867_v32, %v2436_v54  ;;  %v876_v7 = vsel %vm870_vm12, %v868_v11, %v2437_v4 }
 0x1a5   :  { %v655_v58 = vpop.permute.xlu0 %654 }
 0x1a6   :  { %v2440_v34 = vpop.permute.xlu1 %2439  ;;  %v861_v61 = vsel %vm854_vm10, %v853_v39, %v655_v58 }
 0x1a7   :  { %v2442_v30 = vunpack.i.h.bf16 %v2440_v34  ;;  %v2441_v36 = vunpack.i.l.bf16 %v2440_v34  ;;  %v869_v28 = vsel %vm862_vm11, %v861_v61, %v699_v23  ;;  %v964_v34 = vld [vmem:[%s3630_s2 + $0x1] sm:$0x1] }
 0x1a9   :  { %v883_v21 = vsel %vm878_vm13, %v875_v47, %v2441_v36  ;;  %v884_v63 = vsel %vm878_vm13, %v876_v7, %v2442_v30 }
 0x1ae   :  { %v740_v19 = vpop.permute.xlu1 %739 }
 0x1af   :  { %v2445_v16 = vpop.permute.xlu0 %2444  ;;  %v877_v33 = vsel %vm870_vm12, %v869_v28, %v740_v19  ;;  %v1158_v19 = vld [vmem:[%s3629_s1] sm:$0xff] }
 0x1b0   :  { %v2447_v31 = vunpack.i.h.bf16 %v2445_v16  ;;  %v2446_v62 = vunpack.i.l.bf16 %v2445_v16  ;;  %v885_v52 = vsel %vm878_vm13, %v877_v33, %v781_v5 }
 0x1b2   :  { %v891_v56 = vsel %vm886_vm14, %v883_v21, %v2446_v62  ;;  %v892_v25 = vsel %vm886_vm14, %v884_v63, %v2447_v31 }
 0x1b3   :  { %v901_v37 = vpack.c.bf16 %v892_v25, %v891_v56 }
 0x1b5   :  { %1999 = vmatmul.msk.bf16.gmra.mxu0 %vm920_vm15, %v901_v37  ;;  %v3655_v37 = vmov 3  }
 0x1b7   :  { %v822_v44 = vpop.permute.xlu0 %821 }
 0x1b8   :  { %v893_v13 = vsel %vm886_vm14, %v885_v52, %v822_v44  ;;  %v3656_v44 = vmov 8  }
 0x1b9   :  { %v902_v53 = vpack.c.bf16 %v893_v13, %v893_v13 }
 0x1bb   :  { %2000 = vmatmul.msk.bf16.vlgmr.msra.gmra.mxu2 %vm920_vm15, %v902_v53 }
 0x1d6   :  { %v945_v38 = vpop.f32.mrf.mxu0 }
 0x1d7   :  { %v3321_v6 = vadd.f32 %v2457_v24, %v945_v38 }
 0x1d9   :  { %v966_v60 = vmul.f32 %v3321_v6, %v3321_v6 }
 0x1db   :  { %980 = vrot.lane.b32.xlu1 %v966_v60, %s2514_s11 }
 0x1de   :  { %v947_v8 = vpop.f32.mrf.mxu0 }
 0x1df   :  { %v3326_v0 = vadd.f32 %v2457_v24, %v947_v8 }
 0x1e1   :  { %v967_v51 = vmul.f32 %v3326_v0, %v3326_v0 }
 0x1e3   :  { %982 = vrot.lane.b32.xlu2 %v967_v51, %s2514_s11 }
 0x1f4   :  { %v950_v45 = vpop.f32.mrf.mxu0 }
 0x1f5   :  { %v3331_v59 = vadd.f32 %v2457_v24, %v950_v45  ;;  %v3657_v45 = vmov 4  }
 0x1f7   :  { %v968_v41 = vmul.f32 %v3331_v59, %v3331_v59 }
 0x1f9   :  { %984 = vrot.lane.b32.xlu0 %v968_v41, %s2514_s11  ;;  %v3658_v41 = vmov 5  }
 0x1fc   :  { %v952_v43 = vpop.f32.mrf.mxu0 }
 0x1fd   :  { %v3336_v10 = vadd.f32 %v2457_v24, %v952_v43  ;;  %v3659_v43 = vmov 7  }
 0x1ff   :  { %v969_v49 = vmul.f32 %v3336_v10, %v3336_v10 }
 0x201   :  { %986 = vrot.lane.b32.xlu1 %v969_v49, %s2514_s11  ;;  %v3660_v49 = vmov 6  }
 0x232   :  { %v955_v50 = vpop.f32.mrf.mxu0 }
 0x233   :  { %v3341_v35 = vadd.f32 %v2457_v24, %v955_v50  ;;  %v2209_v50 = vld [vmem:[%s3631_s3 + $0x18] sm:$0xff] }
 0x234   :  { %1322 = vmatpush.bf16.msrb.mxu2 %v2209_v50 }
 0x235   :  { %v970_v40 = vmul.f32 %v3341_v35, %v3341_v35 }
 0x237   :  { %988 = vrot.lane.b32.xlu2 %v970_v40, %s2514_s11  ;;  %v2217_v40 = vld [vmem:[%s3631_s3 + $0x58] sm:$0xff] }
 0x238   :  { %1373 = vmatpush.bf16.msra.mxu3 %v2217_v40 }
 0x23a   :  { %v957_v17 = vpop.f32.mrf.mxu0 }
 0x23b   :  { %v3346_v9 = vadd.f32 %v2457_v24, %v957_v17  ;;  %v2208_v17 = vld [vmem:[%s3631_s3 + $0x10] sm:$0xff] }
 0x23c   :  { %1323 = vmatpush.bf16.msrb.mxu2 %v2208_v17 }
 0x23d   :  { %v971_v3 = vmul.f32 %v3346_v9, %v3346_v9  ;;  %v983_v42 = vpop.permute.xlu2 %982 }
 0x23e   :  { %v960_v1 = vpop.f32.mrf.mxu2  ;;  %v1003_v20 = vsel %vm1001_vm7, %v3326_v0, %v983_v42 }
 0x23f   :  { %v3350_v15 = vadd.f32 %v2457_v24, %v960_v1  ;;  %990 = vrot.lane.b32.xlu0 %v971_v3, %s2514_s11  ;;  %v2213_v3 = vld [vmem:[%s3631_s3 + $0x38] sm:$0xff]  ;;  %v2216_v1 = vld [vmem:[%s3631_s3 + $0x50] sm:$0xff] }
 0x240   :  { %1282 = vmatpush.bf16.msra.mxu1 %v2213_v3  ;;  %1374 = vmatpush.bf16.msra.mxu3 %v2216_v1 }
 0x241   :  { %v972_v22 = vmul.f32 %v3350_v15, %v3350_v15 }
 0x243   :  { %992 = vrot.lane.b32.xlu1 %v972_v22, %s2514_s11  ;;  %v2207_v22 = vld [vmem:[%s3631_s3 + $0x8] sm:$0xff] }
 0x244   :  { %1324 = vmatpush.bf16.msrb.mxu2 %v2207_v22  ;;  %v2221_v22 = vld [vmem:[%s3631_s3 + $0x78] sm:$0xff] }
 0x246   :  { %v962_v58 = vpop.f32.mrf.mxu2 }
 0x247   :  { %1041 = vrot.lane.b32.xlu0 %v964_v34, %s2514_s11  ;;  %v965_v58 = vld [vmem:[%s3630_s2 + $0x2] sm:$0x1] }
 0x24d   :  { %v981_v55 = vpop.permute.xlu1 %980 }
 0x24e   :  { %v1002_v12 = vsel %vm1001_vm7, %v3321_v6, %v981_v55 }
 0x24f   :  { %v1009_v26 = vadd.f32 %v1003_v20, %v1002_v12  ;;  %1171 = vperm.xlu0 %2448, %v1158_v19   ;;  %v2215_v20 = vld [vmem:[%s3631_s3 + $0x48] sm:$0xff] }
 0x250   :  { %1375 = vmatpush.bf16.msra.mxu3 %v2215_v20 }
 0x257   :  { %2452 = vset.pattern.permute.xlu0 %v3655_v37 }
 0x258   :  { %1185 = vperm.xlu0 %2452, %v1158_v19  }
 0x260   :  { %2456 = vset.pattern.permute.xlu0 %v3656_v44 }
 0x26b   :  { %v985_v48 = vpop.permute.xlu0 %984 }
 0x26c   :  { %v1004_v46 = vsel %vm1001_vm7, %v3331_v59, %v985_v48 }
 0x26d   :  { %v1010_v2 = vadd.f32 %v1009_v26, %v1004_v46 }
 0x273   :  { %v987_v29 = vpop.permute.xlu1 %986 }
 0x274   :  { %v1005_v14 = vsel %vm1001_vm7, %v3336_v10, %v987_v29  ;;  %v2212_v29 = vld [vmem:[%s3631_s3 + $0x30] sm:$0xff] }
 0x275   :  { %v1011_v32 = vadd.f32 %v1010_v2, %v1005_v14  ;;  %1283 = vmatpush.bf16.msra.mxu1 %v2212_v29  ;;  %v2227_v29 = vld [vmem:[%s3631_s3 + $0xa8] sm:$0xff] }
 0x291   :  { %v989_v27 = vpop.permute.xlu2 %988 }
 0x292   :  { %v1006_v23 = vsel %vm1001_vm7, %v3341_v35, %v989_v27 }
 0x293   :  { %v1012_v11 = vadd.f32 %v1011_v32, %v1006_v23 }
 0x2b1   :  { %v991_v57 = vpop.permute.xlu0 %990 }
 0x2b2   :  { %v1007_v54 = vsel %vm1001_vm7, %v3346_v9, %v991_v57  ;;  %v2206_v57 = vld [vmem:[%s3631_s3] sm:$0xff] }
 0x2b3   :  { %v1013_v36 = vadd.f32 %v1012_v11, %v1007_v54  ;;  %1325 = vmatpush.bf16.msrb.mxu2 %v2206_v57  ;;  %v2219_v57 = vld [vmem:[%s3631_s3 + $0x68] sm:$0xff] }
 0x2b5   :  { %v993_v30 = vpop.permute.xlu1 %992 }
 0x2b6   :  { %v1008_v4 = vsel %vm1001_vm7, %v3350_v15, %v993_v30 }
 0x2b7   :  { %v1014_v18 = vsel %vm177_vm1, %v1008_v4, 0.0 }
 0x2b8   :  { %v1015_v39 = vadd.f32 %v1014_v18, %v1013_v36 }
 0x2b9   :  { %v1042_v24 = vpop.permute.xlu0 %1041 }
 0x2ba   :  { %v1016_v47 = vrot.slane %v1015_v39, 4 }
 0x2bc   :  { %v1017_v16 = vadd.f32 %v1016_v47, %v1015_v39 }
 0x2be   :  { %v1018_v61 = vrot.slane %v1017_v16, 2 }
 0x2c0   :  { %v1019_v7 = vadd.f32 %v1018_v61, %v1017_v16 }
 0x2c2   :  { %v1020_v31 = vrot.slane %v1019_v7, 1 }
 0x2c4   :  { %v1021_v62 = vadd.f32 %v1020_v31, %v1019_v7 }
 0x2c6   :  { %v1022_v21 = vmul.f32 0.02, %v1021_v62 }
 0x2c8   :  { %v1023_v63 = vmul.f32 %v1022_v21, %v1022_v21 }
 0x2ca   :  { %1025 = vrot.lane.b32.xlu2 %v1023_v63, %s2514_s11 }
 0x324   :  { %v1026_v56 = vpop.permute.xlu2 %1025 }
 0x325   :  { %v1028_v25 = vsub.f32 %v1022_v21, %v1026_v56 }
 0x327   :  { %v1029_v28 = vadd.f32 1e-05, %v1028_v25 }
 0x329   :  { %2461 = vrsqrt.f32 %v1029_v28  ;;  %vm1036_vm9 = vweird.f32 %v1029_v28 }
 0x32f   :  { %v2462_v33 = vpop.eup %2461 }
 0x330   :  { %v1031_v5 = vmul.f32 %v2462_v33, %v1029_v28  ;;  %vm1037_vm8 = vweird.f32 %v2462_v33 }
 0x331   :  { %vm1038_vm10 = vmor %vm1036_vm9, %vm1037_vm8 }
 0x332   :  { %v1032_v52 = vmul.f32 %v2462_v33, %v1031_v5 }
 0x334   :  { %v1033_v13 = vmul.f32 0.5, %v1032_v52 }
 0x336   :  { %v1034_v53 = vsub.f32 1.5, %v1033_v13 }
 0x338   :  { %v1035_v38 = vmul.f32 %v2462_v33, %v1034_v53  ;;  %v2210_v53 = vld [vmem:[%s3631_s3 + $0x20] sm:$0xff] }
 0x33a   :  { %v1039_v60 = vsel %vm1038_vm10, %v2462_v33, %v1035_v38 }
 0x33b   :  { %v1044_v8 = vmul.f32 %v1042_v24, %v1039_v60  ;;  %v2229_v24 = vld [vmem:[%s3631_s3 + $0xb8] sm:$0xff] }
 0x33d   :  { %v1045_v51 = vperm.slane %v1044_v8, 0  ;;  %1058 = vrot.lane.b32.xlu1 %v1044_v8, %s2514_s11 }
 0x33f   :  { %1047 = vrot.lane.b32.xlu2 %v1045_v51, %s2514_s11  ;;  %v2224_v51 = vld [vmem:[%s3631_s3 + $0x90] sm:$0xff] }
 0x345   :  { %1178 = vperm.xlu1 %2449, %v1158_v19  }
 0x347   :  { %1166 = vperm.xlu2 %2367, %v1158_v19  }
 0x34d   :  { %2450 = vset.pattern.permute.xlu1 %v3657_v45 }
 0x34e   :  { %1192 = vperm.xlu1 %2450, %v1158_v19  }
 0x34f   :  { %2451 = vset.pattern.permute.xlu2 %v3658_v41 }
 0x350   :  { %1199 = vperm.xlu2 %2451, %v1158_v19  }
 0x356   :  { %2453 = vset.pattern.permute.xlu1 %v3659_v43 }
 0x357   :  { %1213 = vperm.xlu1 %2453, %v1158_v19  }
 0x358   :  { %2454 = vset.pattern.permute.xlu2 %v3656_v44 }
 0x359   :  { %1220 = vperm.xlu2 %2454, %v1158_v19  }
 0x35f   :  { %2455 = vset.pattern.permute.xlu1 %v3660_v49 }
 0x360   :  { %1206 = vperm.xlu1 %2455, %v1158_v19  }
 0x399   :  { %v1048_v55 = vpop.permute.xlu2 %1047 }
 0x39a   :  { %v1050_v12 = vmul.f32 %v1048_v55, %v3321_v6  ;;  %v1051_v46 = vmul.f32 %v1048_v55, %v3326_v0  ;;  %v1052_v26 = vmul.f32 %v1048_v55, %v3331_v59  ;;  %v1053_v27 = vmul.f32 %v1048_v55, %v3336_v10 }
 0x39b   :  { %v1054_v2 = vmul.f32 %v1048_v55, %v3341_v35  ;;  %v1055_v23 = vmul.f32 %v1048_v55, %v3346_v9  ;;  %v1056_v6 = vmul.f32 %v1048_v55, %v3350_v15  ;;  %v2211_v35 = vld [vmem:[%s3631_s3 + $0x28] sm:$0xff]  ;;  %v2214_v9 = vld [vmem:[%s3631_s3 + $0x40] sm:$0xff] }
 0x39c   :  { %1284 = vmatpush.bf16.msra.mxu1 %v2211_v35  ;;  %1376 = vmatpush.bf16.msra.mxu3 %v2214_v9 }
 0x3a0   :  { %1285 = vmatpush.bf16.msra.mxu1 %v2210_v53  ;;  %1535 = vmatpush.bf16.msrb.mxu3 %v2229_v24 }
 0x3a4   :  { %1425 = vmatpush.bf16.msrb.mxu1 %v2221_v22 }
 0x3af   :  { %v1059_v34 = vpop.permute.xlu1 %1058 }
 0x3b0   :  { %v1061_v42 = vmul.f32 %v1059_v34, %v1022_v21  ;;  %v2225_v21 = vld [vmem:[%s3631_s3 + $0x98] sm:$0xff]  ;;  %v2223_v34 = vld [vmem:[%s3631_s3 + $0x88] sm:$0xff] }
 0x3b1   :  { %1483 = vmatpush.bf16.msra.mxu2 %v2225_v21 }
 0x3b2   :  { %v1062_v48 = vsub.f32 %v965_v58, %v1061_v42  ;;  %v2228_v58 = vld [vmem:[%s3631_s3 + $0xb0] sm:$0xff] }
 0x3b3   :  { %1536 = vmatpush.bf16.msrb.mxu3 %v2228_v58 }
 0x3b4   :  { %v1063_v14 = vperm.slane %v1062_v48, 0 }
 0x3b5   :  { %1484 = vmatpush.bf16.msra.mxu2 %v2224_v51 }
 0x3b6   :  { %v1064_v32 = vadd.f32 %v1063_v14, %v1050_v12  ;;  %v1065_v54 = vadd.f32 %v1063_v14, %v1051_v46  ;;  %v1066_v0 = vadd.f32 %v1063_v14, %v1052_v26  ;;  %v1067_v11 = vadd.f32 %v1063_v14, %v1053_v27  ;;  %v2220_v12 = vld [vmem:[%s3631_s3 + $0x70] sm:$0xff]  ;;  %v2222_v27 = vld [vmem:[%s3631_s3 + $0x80] sm:$0xff] }
 0x3b7   :  { %v1068_v59 = vadd.f32 %v1063_v14, %v1054_v2  ;;  %v1069_v30 = vadd.f32 %v1063_v14, %v1055_v23  ;;  %v1070_v10 = vadd.f32 %v1063_v14, %v1056_v6  ;;  %1426 = vmatpush.bf16.msrb.mxu1 %v2220_v12  ;;  %1537 = vmatpush.bf16.msrb.mxu3 %v2227_v29 }
 0x3b8   :  { %v1071_v15 = vmax.f32 %v1064_v32, 0.0  ;;  %v1072_v36 = vmax.f32 %v1065_v54, 0.0  ;;  %v1073_v4 = vmax.f32 %v1066_v0, 0.0  ;;  %v1074_v18 = vmax.f32 %v1067_v11, 0.0  ;;  %v2226_v32 = vld [vmem:[%s3631_s3 + $0xa0] sm:$0xff] }
 0x3b9   :  { %v1075_v39 = vmax.f32 %v1068_v59, 0.0  ;;  %v1076_v47 = vmax.f32 %v1069_v30, 0.0  ;;  %v1077_v16 = vmax.f32 %v1070_v10, 0.0  ;;  %1485 = vmatpush.bf16.msra.mxu2 %v2223_v34  ;;  %v1179_v30 = vpop.permute.xlu1 %1178  ;;  %v2232_v34 = vld [vmem:[%s3631_s3 + $0xd0] sm:$0xff] }
 0x3ba   :  { %v1086_v61 = vrot.slane %v1071_v15, 1  ;;  %v1087_v7 = vrot.slane %v1072_v36, 1  ;;  %v1089_v31 = vrot.slane %v1073_v4, 1  ;;  %v1091_v62 = vrot.slane %v1074_v18, 1 }
 0x3bb   :  { %v1078_v63 = vsel %vm177_vm1, %v1077_v16, 0.0  ;;  %v1093_v19 = vrot.slane %v1075_v39, 1  ;;  %v1095_v56 = vrot.slane %v1076_v47, 1  ;;  %1427 = vmatpush.bf16.msrb.mxu1 %v2219_v57  ;;  %1538 = vmatpush.bf16.msrb.mxu3 %v2226_v32 }
 0x3bc   :  { %v1088_v25 = vsel %vm323_vm5, %v1086_v61, %v1087_v7  ;;  %v1090_v28 = vsel %vm323_vm5, %v1087_v7, %v1089_v31  ;;  %v1092_v37 = vsel %vm323_vm5, %v1089_v31, %v1091_v62  ;;  %v1097_v33 = vrot.slane %v1078_v63, 1 }
 0x3bd   :  { %v1094_v5 = vsel %vm323_vm5, %v1091_v62, %v1093_v19  ;;  %v1105_v44 = vmax.f32 %v1071_v15, %v1088_v25  ;;  %v1106_v52 = vmax.f32 %v1072_v36, %v1090_v28  ;;  %v1107_v13 = vmax.f32 %v1073_v4, %v1092_v37  ;;  %1486 = vmatpush.bf16.msra.mxu2 %v2222_v27  ;;  %v2218_v36 = vld [vmem:[%s3631_s3 + $0x60] sm:$0xff] }
 0x3be   :  { %v1098_v38 = vsel %vm323_vm5, %v1095_v56, %v1097_v33  ;;  %v1108_v60 = vmax.f32 %v1074_v18, %v1094_v5  ;;  %v1096_v8 = vsel %vm323_vm5, %v1093_v19, %v1095_v56  ;;  %v1180_v31 = vrot.slane %v1179_v30, 6  ;;  %v1167_v19 = vpop.permute.xlu2 %1166  ;;  %v2237_v5 = vld [vmem:[%s3631_s3 + $0xf8] sm:$0xff] }
 0x3bf   :  { %v1110_v45 = vmax.f32 %v1076_v47, %v1098_v38  ;;  %v1117_v41 = vrot.slane %v1105_v44, 5  ;;  %v1118_v43 = vrot.slane %v1106_v52, 5  ;;  %v1120_v49 = vrot.slane %v1107_v13, 5  ;;  %v1172_v47 = vpop.permute.xlu0 %1171  ;;  %1428 = vmatpush.bf16.msrb.mxu1 %v2218_v36  ;;  %v2241_v38 = vld [vmem:[%s3631_s3 + $0x118] sm:$0xff] }
 0x3c0   :  { %v1122_v50 = vrot.slane %v1108_v60, 5  ;;  %v1109_v40 = vmax.f32 %v1075_v39, %v1096_v8  ;;  %v1173_v16 = vrot.slane %v1172_v47, 7  ;;  %v2236_v8 = vld [vmem:[%s3631_s3 + $0xf0] sm:$0xff] }
 0x3c1   :  { %v1119_v17 = vsel %vm422_vm2, %v1117_v41, %v1118_v43  ;;  %v1121_v3 = vsel %vm422_vm2, %v1118_v43, %v1120_v49  ;;  %v1125_v1 = vrot.slane %v1110_v45, 5  ;;  %v1193_v63 = vpop.permute.xlu1 %1192  ;;  %v2233_v43 = vld [vmem:[%s3631_s3 + $0xd8] sm:$0xff] }
 0x3c2   :  { %v1131_v55 = vmax.f32 %v1105_v44, %v1119_v17  ;;  %v1123_v42 = vrot.slane %v1109_v40, 5  ;;  %v1132_v48 = vmax.f32 %v1106_v52, %v1121_v3  ;;  %v1194_v56 = vrot.slane %v1193_v63, 5 }
 0x3c4   :  { %v1136_v20 = vrot.slane %v1131_v55, 1  ;;  %v1124_v46 = vsel %vm422_vm2, %v1122_v50, %v1123_v42  ;;  %v1126_v26 = vsel %vm422_vm2, %v1123_v42, %v1125_v1  ;;  %v1139_v6 = vrot.slane %v1132_v48, 1  ;;  %v2235_v1 = vld [vmem:[%s3631_s3 + $0xe8] sm:$0xff] }
 0x3c5   :  { %v1133_v14 = vmax.f32 %v1108_v60, %v1124_v46  ;;  %v1134_v2 = vmax.f32 %v1109_v40, %v1126_v26  ;;  %v2240_v40 = vld [vmem:[%s3631_s3 + $0x110] sm:$0xff]  ;;  %v2239_v42 = vld [vmem:[%s3631_s3 + $0x108] sm:$0xff] }
 0x3c6   :  { %v1151_v23 = vsel %vm128_vm3, %v1131_v55, %v1136_v20  ;;  %v1200_v49 = vpop.permute.xlu2 %1199  ;;  %v2234_v20 = vld [vmem:[%s3631_s3 + $0xe0] sm:$0xff] }
 0x3c7   :  { %v1142_v54 = vrot.slane %v1133_v14, 5  ;;  %v1152_v0 = vsel %vm177_vm1, %v1151_v23, %v1132_v48  ;;  %v1144_v11 = vrot.slane %v1133_v14, 6  ;;  %v1147_v10 = vrot.slane %v1134_v2, 5  ;;  %v1186_v3 = vpop.permute.xlu0 %1185  ;;  %v2231_v14 = vld [vmem:[%s3631_s3 + $0xc8] sm:$0xff] }
 0x3c8   :  { %v1153_v59 = vsel %vm422_vm2, %v1152_v0, %v1139_v6  ;;  %v1149_v9 = vrot.slane %v1134_v2, 6  ;;  %v1201_v17 = vrot.slane %v1200_v49, 4  ;;  %v1187_v55 = vrot.slane %v1186_v3, 6  ;;  %v2238_v6 = vld [vmem:[%s3631_s3 + $0x100] sm:$0xff] }
 0x3c9   :  { %v1154_v35 = vsel %vm471_vm6, %v1153_v59, %v1142_v54  ;;  %v1214_v29 = vpop.permute.xlu1 %1213 }
 0x3ca   :  { %v1155_v15 = vsel %vm226_vm4, %v1154_v35, %v1144_v11  ;;  %v1215_v27 = vrot.slane %v1214_v29, 3  ;;  %v2230_v11 = vld [vmem:[%s3631_s3 + $0xc0] sm:$0xff] }
 0x3cb   :  { %v1156_v4 = vsel %vm43_vm0, %v1155_v15, %v1147_v10  ;;  %v1710_v29 = vld [vmem:[%s3630_s2 + $0x4] sm:$0x1] }
 0x3cc   :  { %v1157_v18 = vsel %vm323_vm5, %v1156_v4, %v1149_v9  ;;  %1743 = vrot.lane.b32.xlu1 %v1710_v29, %s2514_s11 }
 0x3cd   :  { %v1160_v39 = vrot.slane %v1157_v18, 5 }
 0x3ce   :  { %v1221_v35 = vpop.permute.xlu2 %1220 }
 0x3cf   :  { %v3489_v61 = vsel %vm422_vm2, 0.0, %v1160_v39  ;;  %v3492_v7 = vsel %vm422_vm2, %v1160_v39, 0.0  ;;  %v1222_v15 = vrot.slane %v1221_v35, 2 }
 0x3d0   :  { %v1175_v62 = vmul.f32 %v1173_v16, %v3489_v61  ;;  %v1176_v21 = vmul.f32 %v1173_v16, %v3492_v7  ;;  %v1182_v25 = vmul.f32 %v1180_v31, %v3489_v61  ;;  %v1183_v28 = vmul.f32 %v1180_v31, %v3492_v7 }
 0x3d1   :  { %v1169_v37 = vmul.f32 %v1167_v19, %v3489_v61  ;;  %v1196_v44 = vmul.f32 %v1194_v56, %v3489_v61  ;;  %v1197_v52 = vmul.f32 %v1194_v56, %v3492_v7  ;;  %v1203_v48 = vmul.f32 %v1201_v17, %v3489_v61 }
 0x3d2   :  { %v1243_v33 = vpack.c.bf16 %v1176_v21, %v1175_v62  ;;  %v1339_v53 = vpack.c.bf16 %v1183_v28, %v1182_v25  ;;  %v1204_v12 = vmul.f32 %v1201_v17, %v3492_v7  ;;  %v1189_v2 = vmul.f32 %v1187_v55, %v3489_v61  ;;  %v1207_v36 = vpop.permute.xlu1 %1206 }
 0x3d3   :  { %v1234_v13 = vpack.c.bf16 %v1169_v37, %v1169_v37  ;;  %v1443_v51 = vpack.c.bf16 %v1197_v52, %v1196_v44  ;;  %v1190_v23 = vmul.f32 %v1187_v55, %v3492_v7  ;;  %v1217_v54 = vmul.f32 %v1215_v27, %v3489_v61 }
 0x3d4   :  { %v1247_v24 = vshll.u32 %v1243_v33, 16  ;;  %v1341_v60 = vrot.slane %v1339_v53, 1  ;;  %v1245_v45 = vshrl.u32 %v1243_v33, 16  ;;  %v1501_v57 = vpack.c.bf16 %v1204_v12, %v1203_v48 }
 0x3d5   :  { %2034 = vmatmul.msk.bf16.vlgmr.msrb.gmra.mxu2 %vm1001_vm7, %v1234_v13  ;;  %v1445_v22 = vshrl.u32 %v1443_v51, 16  ;;  %v1448_v58 = vshll.u32 %v1443_v51, 16  ;;  %v1218_v0 = vmul.f32 %v1215_v27, %v3492_v7  ;;  %v1391_v59 = vpack.c.bf16 %v1190_v23, %v1189_v2 }
 0x3d6   :  { %1645 = vmatpush.bf16.msrb.mxu2 %v2237_v5  ;;  %v1249_v41 = vrot.slane %v1247_v24, 1  ;;  %2051 = vmatmul.msk.bf16.vlgmr.msra.gmra.mxu3 %vm1001_vm7, %v1341_v60  ;;  %v1503_v30 = vrot.slane %v1501_v57, 2  ;;  %v1208_v39 = vrot.slane %v1207_v36, 4  ;;  %v1224_v47 = vmul.f32 %v1222_v15, %v3489_v61 }
 0x3d7   :  { %1697 = vmatpush.bf16.msra.mxu3 %v2241_v38  ;;  %v1447_v46 = vrot.slane %v1445_v22, 1  ;;  %v1450_v26 = vrot.slane %v1448_v58, 2  ;;  %v1605_v10 = vpack.c.bf16 %v1218_v0, %v1217_v54  ;;  %v1393_v9 = vrot.slane %v1391_v59, 1  ;;  %v2458_v22 = vld [vmem:[%s3630_s2 + $0x3] ss:$0 sm:$0xff] }
 0x3d8   :  { %v1250_v50 = vor.u32 %v1249_v41, %v1245_v45  ;;  %v1225_v16 = vmul.f32 %v1222_v15, %v3492_v7  ;;  %v1210_v21 = vmul.f32 %v1208_v39, %v3489_v61  ;;  %v1211_v63 = vmul.f32 %v1208_v39, %v3492_v7 }
 0x3d9   :  { %v1451_v32 = vor.u32 %v1450_v26, %v1447_v46  ;;  %v1607_v4 = vshrl.u32 %v1605_v10, 16  ;;  %v1610_v18 = vshll.u32 %v1605_v10, 16 }
 0x3da   :  { %1646 = vmatpush.bf16.msrb.mxu2 %v2236_v8  ;;  %2017 = vmatmul.msk.bf16.vlgmr.msra.gmra.mxu1 %vm1001_vm7, %v1250_v50  ;;  %v1663_v19 = vpack.c.bf16 %v1225_v16, %v1224_v47  ;;  %v1553_v25 = vpack.c.bf16 %v1211_v63, %v1210_v21  ;;  %v2245_v47 = vld [vmem:[%s3632_s4 + $0x18] sm:$0xff]  ;;  %v2244_v16 = vld [vmem:[%s3632_s4 + $0x10] sm:$0xff] }
 0x3db   :  { %1587 = vmatpush.bf16.msra.mxu1 %v2233_v43  ;;  %1698 = vmatpush.bf16.msra.mxu3 %v2240_v40  ;;  %v1609_v31 = vrot.slane %v1607_v4, 2  ;;  %v1612_v62 = vrot.slane %v1610_v18, 3 }
 0x3dc   :  { %v1665_v28 = vrot.slane %v1663_v19, 3  ;;  %v1555_v37 = vrot.slane %v1553_v25, 2  ;;  %v1711_v19 = vld [vmem:[%s3630_s2 + $0x5] sm:$0x1] }
 0x3dd   :  { %v1613_v56 = vor.u32 %v1612_v62, %v1609_v31  ;;  %v2243_v31 = vld [vmem:[%s3632_s4 + $0x8] sm:$0xff]  ;;  %v2242_v62 = vld [vmem:[%s3632_s4] sm:$0xff] }
 0x3de   :  { %1647 = vmatpush.bf16.msrb.mxu2 %v2235_v1 }
 0x3df   :  { %1588 = vmatpush.bf16.msra.mxu1 %v2232_v34  ;;  %1699 = vmatpush.bf16.msra.mxu3 %v2239_v42 }
 0x3e2   :  { %1648 = vmatpush.bf16.msrb.mxu2 %v2234_v20 }
 0x3e3   :  { %1589 = vmatpush.bf16.msra.mxu1 %v2231_v14  ;;  %1700 = vmatpush.bf16.msra.mxu3 %v2238_v6 }
 0x3e5   :  { %2085 = vmatmul.msk.bf16.vlgmr.msra.gmra.mxu2 %vm1001_vm7, %v1451_v32 }
 0x3e6   :  { %2102 = vmatmul.msk.bf16.vlgmr.msrb.gmra.mxu3 %vm1001_vm7, %v1503_v30 }
 0x3e7   :  { %1590 = vmatpush.bf16.msra.mxu1 %v2230_v11 }
 0x3ea   :  { %2068 = vmatmul.msk.bf16.vlgmr.msrb.gmra.mxu1 %vm1001_vm7, %v1393_v9 }
 0x3eb   :  { %1824 = vmatpush.bf16.msrb.mxu1 %v2245_v47  ;;  %v1834_v47 = vld [vmem:[%s3630_s2 + $0x7] sm:$0x1] }
 0x3ef   :  { %1825 = vmatpush.bf16.msrb.mxu1 %v2244_v16 }
 0x3f3   :  { %1826 = vmatpush.bf16.msrb.mxu1 %v2243_v31 }
 0x3f5   :  { %2136 = vmatmul.msk.bf16.vlgmr.msrb.gmra.mxu2 %vm1001_vm7, %v1613_v56 }
 0x3f6   :  { %2153 = vmatmul.msk.bf16.vlgmr.msra.gmra.mxu3 %vm1001_vm7, %v1665_v28 }
 0x3f7   :  { %1827 = vmatpush.bf16.msrb.mxu1 %v2242_v62 }
 0x3fa   :  { %2119 = vmatmul.msk.bf16.vlgmr.msra.gmra.mxu1 %vm1001_vm7, %v1555_v37 }
 0x43e   :  { %v1744_v15 = vpop.permute.xlu1 %1743 }
 0x457   :  { %v1287_v33 = vpop.f32.mrf.mxu1 }
 0x458   :  { %v1327_v5 = vpop.f32.mrf.mxu2 }
 0x459   :  { %v1378_v44 = vpop.f32.mrf.mxu3  ;;  %v1328_v7 = vadd.f32 %v1327_v5, %v1287_v33  ;;  %v2515_v33 = vmov 0.0  }
 0x45a   :  { %v1765_v5 = vrot.slane %v2515_v33, 1 }
 0x45b   :  { %v1382_v60 = vadd.f32 %v1378_v44, %v1328_v7 }
 0x45f   :  { %v1289_v52 = vpop.f32.mrf.mxu1 }
 0x460   :  { %v1329_v13 = vpop.f32.mrf.mxu2 }
 0x461   :  { %v1380_v53 = vpop.f32.mrf.mxu3  ;;  %v1770_v13 = vmax.f32 %v1765_v5, 0.0 }
 0x467   :  { %v1430_v61 = vpop.f32.mrf.mxu1 }
 0x468   :  { %v1488_v24 = vpop.f32.mrf.mxu2  ;;  %v1434_v8 = vadd.f32 %v1430_v61, %v1382_v60 }
 0x469   :  { %v1540_v38 = vpop.f32.mrf.mxu3 }
 0x46a   :  { %v1492_v41 = vadd.f32 %v1488_v24, %v1434_v8  ;;  %v1774_v24 = vrot.slane %v1770_v13, 2 }
 0x46c   :  { %v1544_v49 = vadd.f32 %v1540_v38, %v1492_v41 }
 0x46f   :  { %v1432_v51 = vpop.f32.mrf.mxu1 }
 0x470   :  { %v1490_v45 = vpop.f32.mrf.mxu2 }
 0x471   :  { %v1542_v43 = vpop.f32.mrf.mxu3 }
 0x472   :  { %v2253_v43 = vld [vmem:[%s3632_s4 + $0x58] sm:$0xff] }
 0x473   :  { %1940 = vmatpush.bf16.msrb.mxu0 %v2253_v43 }
 0x477   :  { %v1592_v50 = vpop.f32.mrf.mxu1 }
 0x478   :  { %v1650_v40 = vpop.f32.mrf.mxu2  ;;  %v1596_v17 = vadd.f32 %v1592_v50, %v1544_v49  ;;  %v2252_v49 = vld [vmem:[%s3632_s4 + $0x50] sm:$0xff]  ;;  %v2459_v50 = vld [vmem:[%s3630_s2 + $0x6] ss:$0 sm:$0xff] }
 0x479   :  { %v1702_v1 = vpop.f32.mrf.mxu3  ;;  %1941 = vmatpush.bf16.msrb.mxu0 %v2252_v49 }
 0x47a   :  { %v1654_v3 = vadd.f32 %v1650_v40, %v1596_v17  ;;  %v2251_v17 = vld [vmem:[%s3632_s4 + $0x48] sm:$0xff] }
 0x47c   :  { %v1706_v58 = vadd.f32 %v1702_v1, %v1654_v3 }
 0x47d   :  { %1942 = vmatpush.bf16.msrb.mxu0 %v2251_v17 }
 0x47e   :  { %v1709_v34 = vadd.f32 %v2458_v22, %v1706_v58  ;;  %v2250_v22 = vld [vmem:[%s3632_s4 + $0x40] sm:$0xff] }
 0x47f   :  { %v1594_v55 = vpop.f32.mrf.mxu1 }
 0x480   :  { %v1652_v42 = vpop.f32.mrf.mxu2  ;;  %v1712_v48 = vmul.f32 %v1709_v34, %v1709_v34 }
 0x481   :  { %v1704_v12 = vpop.f32.mrf.mxu3  ;;  %1943 = vmatpush.bf16.msrb.mxu0 %v2250_v22 }
 0x482   :  { %1714 = vrot.lane.b32.xlu2 %v1712_v48, %s2514_s11 }
 0x4dc   :  { %v1715_v20 = vpop.permute.xlu2 %1714 }
 0x4dd   :  { %v1717_v46 = vsel %vm1001_vm7, %v1709_v34, %v1715_v20  ;;  %v2249_v20 = vld [vmem:[%s3632_s4 + $0x38] sm:$0xff] }
 0x4de   :  { %v1718_v26 = vrot.slane %v1717_v46, 4  ;;  %1944 = vmatpush.bf16.msrb.mxu0 %v2249_v20 }
 0x4e0   :  { %v1719_v27 = vadd.f32 %v1718_v26, %v1717_v46 }
 0x4e2   :  { %v1720_v14 = vrot.slane %v1719_v27, 2 }
 0x4e4   :  { %v1721_v2 = vadd.f32 %v1720_v14, %v1719_v27 }
 0x4e6   :  { %v1722_v23 = vrot.slane %v1721_v2, 1 }
 0x4e8   :  { %v1723_v6 = vadd.f32 %v1722_v23, %v1721_v2  ;;  %v2248_v2 = vld [vmem:[%s3632_s4 + $0x30] sm:$0xff] }
 0x4e9   :  { %1945 = vmatpush.bf16.msrb.mxu0 %v2248_v2 }
 0x4ea   :  { %v1724_v57 = vmul.f32 0.125, %v1723_v6 }
 0x4ec   :  { %v1725_v32 = vmul.f32 %v1724_v57, %v1724_v57 }
 0x4ee   :  { %1727 = vrot.lane.b32.xlu0 %v1725_v32, %s2514_s11 }
 0x560   :  { %v1728_v54 = vpop.permute.xlu0 %1727 }
 0x561   :  { %v1730_v0 = vsub.f32 %v1724_v57, %v1728_v54  ;;  %v2247_v54 = vld [vmem:[%s3632_s4 + $0x28] sm:$0xff] }
 0x562   :  { %1946 = vmatpush.bf16.msrb.mxu0 %v2247_v54 }
 0x563   :  { %v1731_v11 = vadd.f32 1e-05, %v1730_v0 }
 0x565   :  { %2463 = vrsqrt.f32 %v1731_v11  ;;  %vm1738_vm4 = vweird.f32 %v1731_v11 }
 0x56b   :  { %v2464_v59 = vpop.eup %2463 }
 0x56c   :  { %v1733_v30 = vmul.f32 %v2464_v59, %v1731_v11  ;;  %vm1739_vm2 = vweird.f32 %v2464_v59 }
 0x56d   :  { %vm1740_vm6 = vmor %vm1738_vm4, %vm1739_vm2 }
 0x56e   :  { %v1734_v10 = vmul.f32 %v2464_v59, %v1733_v30 }
 0x570   :  { %v1735_v35 = vmul.f32 0.5, %v1734_v10 }
 0x572   :  { %v1736_v9 = vsub.f32 1.5, %v1735_v35 }
 0x574   :  { %v1737_v36 = vmul.f32 %v2464_v59, %v1736_v9 }
 0x576   :  { %v1741_v4 = vsel %vm1740_vm6, %v2464_v59, %v1737_v36  ;;  %v2246_v59 = vld [vmem:[%s3632_s4 + $0x20] sm:$0xff] }
 0x577   :  { %v1746_v18 = vmul.f32 %v1744_v15, %v1741_v4  ;;  %1947 = vmatpush.bf16.msrb.mxu0 %v2246_v59 }
 0x579   :  { %v1747_v39 = vperm.slane %v1746_v18, 0  ;;  %1754 = vrot.lane.b32.xlu2 %v1746_v18, %s2514_s11 }
 0x57b   :  { %1749 = vrot.lane.b32.xlu0 %v1747_v39, %s2514_s11 }
 0x5d3   :  { %v1755_v21 = vpop.permute.xlu2 %1754 }
 0x5d4   :  { %v1757_v63 = vmul.f32 %v1755_v21, %v1724_v57  ;;  %v1835_v21 = vld [vmem:[%s3630_s2 + $0x8] sm:$0x1] }
 0x5d6   :  { %v1758_v56 = vsub.f32 %v1711_v19, %v1757_v63 }
 0x5d8   :  { %v1759_v28 = vperm.slane %v1758_v56, 0 }
 0x5ed   :  { %v1750_v25 = vpop.permute.xlu0 %1749 }
 0x5ee   :  { %v1752_v37 = vmul.f32 %v1750_v25, %v1709_v34 }
 0x5f0   :  { %v1760_v44 = vadd.f32 %v1759_v28, %v1752_v37 }
 0x5f2   :  { %v1761_v52 = vmax.f32 %v1760_v44, 0.0 }
 0x5f4   :  { %v1764_v53 = vrot.slane %v1761_v52, 1 }
 0x5f6   :  { %v1766_v61 = vsel %vm323_vm5, %v1764_v53, %v1765_v5  ;;  %v2460_v5 = vld [vmem:[%s3630_s2 + $0x9] ss:$0 sm:$0xff]  ;;  %s1980_s2 = sshll.u32 %s3633_s5, 4  ;;  %s1981_s2 = int_to_ptr.hbm [resolvable:$true] %s1980_s2 }
 0x5f7   :  { %v1769_v7 = vmax.f32 %v1761_v52, %v1766_v61 }
 0x5f9   :  { %v1773_v38 = vrot.slane %v1769_v7, 2 }
 0x5fb   :  { %v1775_v60 = vsel %vm43_vm0, %v1773_v38, %v1774_v24 }
 0x5fc   :  { %v1777_v8 = vmax.f32 %v1769_v7, %v1775_v60 }
 0x5fe   :  { %v1779_v51 = vrot.slane %v1777_v8, 3 }
 0x600   :  { %v1781_v45 = vsel %vm128_vm3, %v1777_v8, %v1779_v51 }
 0x601   :  { %v1790_v41 = vpack.c.bf16 %v1781_v45, %v1781_v45 }
 0x603   :  { %2170 = vmatmul.msk.bf16.vlgmr.msrb.gmra.mxu1 %vm1001_vm7, %v1790_v41 }
 0x680   :  { %v1829_v40 = vpop.f32.mrf.mxu1 }
 0x681   :  { %v1830_v3 = vadd.f32 %v2459_v50, %v1829_v40 }
 0x683   :  { %v1833_v1 = vmax.f32 %v1830_v3, 0.0 }
 0x685   :  { %v1836_v58 = vmul.f32 %v1833_v1, %v1833_v1  ;;  %v1837_v34 = vsel %vm177_vm1, %v1833_v1, 0.0 }
 0x686   :  { %v1838_v55 = vrot.slane %v1837_v34, 4 }
 0x687   :  { %v1844_v42 = vsel %vm177_vm1, %v1836_v58, 0.0 }
 0x688   :  { %v1839_v48 = vadd.f32 %v1838_v55, %v1837_v34  ;;  %v1845_v12 = vrot.slane %v1844_v42, 4  ;;  %v1831_v29 = vpop.f32.mrf.mxu1 }
 0x68a   :  { %v1840_v46 = vrot.slane %v1839_v48, 2  ;;  %v1846_v26 = vadd.f32 %v1845_v12, %v1844_v42 }
 0x68c   :  { %v1841_v27 = vadd.f32 %v1840_v46, %v1839_v48  ;;  %v1847_v14 = vrot.slane %v1846_v26, 2 }
 0x68e   :  { %v1842_v23 = vrot.slane %v1841_v27, 1  ;;  %v1848_v6 = vadd.f32 %v1847_v14, %v1846_v26 }
 0x690   :  { %v1843_v57 = vadd.f32 %v1842_v23, %v1841_v27  ;;  %v1849_v32 = vrot.slane %v1848_v6, 1 }
 0x692   :  { %v1850_v0 = vadd.f32 %v1849_v32, %v1848_v6  ;;  %v1851_v11 = vmul.f32 0.5, %v1843_v57 }
 0x694   :  { %v1852_v30 = vmul.f32 0.5, %v1850_v0  ;;  %v1853_v10 = vmul.f32 %v1851_v11, %v1851_v11 }
 0x696   :  { %v1854_v35 = vsub.f32 %v1852_v30, %v1853_v10 }
 0x698   :  { %v1855_v9 = vadd.f32 1e-05, %v1854_v35 }
 0x69a   :  { %2465 = vrsqrt.f32 %v1855_v9  ;;  %vm1862_vm1 = vweird.f32 %v1855_v9 }
 0x6a0   :  { %v2466_v15 = vpop.eup %2465 }
 0x6a1   :  { %v1857_v36 = vmul.f32 %v2466_v15, %v1855_v9  ;;  %vm1863_vm0 = vweird.f32 %v2466_v15 }
 0x6a2   :  { %vm1864_vm3 = vmor %vm1862_vm1, %vm1863_vm0 }
 0x6a3   :  { %v1858_v4 = vmul.f32 %v2466_v15, %v1857_v36 }
 0x6a5   :  { %v1859_v18 = vmul.f32 0.5, %v1858_v4 }
 0x6a7   :  { %v1860_v39 = vsub.f32 1.5, %v1859_v18 }
 0x6a9   :  { %v1861_v16 = vmul.f32 %v2466_v15, %v1860_v39 }
 0x6ab   :  { %v1865_v31 = vsel %vm1864_vm3, %v2466_v15, %v1861_v16 }
 0x6ac   :  { %v1866_v62 = vmul.f32 %v1865_v31, %v1834_v47 }
 0x6ae   :  { %v1867_v63 = vperm.slane %v1866_v62, 0  ;;  %v1869_v19 = vmul.f32 %v1866_v62, %v1851_v11 }
 0x6b0   :  { %v1870_v56 = vsub.f32 %v1835_v21, %v1869_v19  ;;  %v1868_v25 = vmul.f32 %v1867_v63, %v1833_v1 }
 0x6b2   :  { %v1871_v28 = vperm.slane %v1870_v56, 0 }
 0x6b4   :  { %v1872_v37 = vadd.f32 %v1871_v28, %v1868_v25 }
 0x6b6   :  { %v1889_v33 = vpack.c.bf16 %v1872_v37, %v1872_v37 }
 0x6b8   :  { %1948 = vmatmul.bf16.vlgmr.msrb.gmra.mxu0 %v1889_v33 }
 0x735   :  { %v1949_v44 = vpop.f32.mrf.mxu0 }
 0x736   :  { %v1950_v52 = vadd.f32 %v2460_v5, %v1949_v44 }
 0x738   :  { %v2203_v13 = vmul.f32 -1.442695, %v1950_v52 }
 0x73a   :  { %2467 = vpow2.f32 %v2203_v13 }
 0x73d   :  { %v1951_v53 = vpop.f32.mrf.mxu0 }
 0x740   :  { %v2468_v61 = vpop.eup %2467 }
 0x741   :  { %v1956_v24 = vadd.f32 1.0, %v2468_v61 }
 0x743   :  { %2469 = vrcp.f32 %v1956_v24  ;;  %v1968_v8 = vand.u32 2147483648, %v1956_v24  ;;  %v1966_v45 = vand.u32 2147483647, %v1956_v24  ;;  %vm1962_vm11 = vweird.f32 %v1956_v24 }
 0x745   :  { %v1969_v43 = vor.u32 1.1754944e-38, %v1968_v8  ;;  %vm1967_vm13 = vcmp.eq.f32.partialorder %v1966_v45, 8.507059e+37 }
 0x749   :  { %v2470_v7 = vpop.eup %2469 }
 0x74a   :  { %v1958_v38 = vmul.f32 %v2470_v7, %v1956_v24  ;;  %vm1963_vm5 = vweird.f32 %v2470_v7 }
 0x74b   :  { %vm1964_vm12 = vmor %vm1962_vm11, %vm1963_vm5 }
 0x74c   :  { %v1959_v60 = vsub.f32 1.0, %v1958_v38 }
 0x74e   :  { %v1960_v51 = vmul.f32 %v2470_v7, %v1959_v60 }
 0x750   :  { %v1961_v41 = vadd.f32 %v2470_v7, %v1960_v51 }
 0x752   :  { %v1965_v49 = vsel %vm1964_vm12, %v2470_v7, %v1961_v41 }
 0x753   :  { %v1970_v50 = vsel %vm1967_vm13, %v1969_v43, %v1965_v49 }
 0x754   :  { %1972 = vst [vmem:[#allocation2] sm:$0x3] %v1970_v50 }
 0x755   :  { %1983 = dma.vmem_to_hbm [thread:$0]  %s1979_s20, 32, %s1981_s2, [#allocation3]  }
 0x756   :  { %2495 = dma.done.wait [#allocation3], 32  }
 0x757   :  { %2496 = vsyncadd [#allocation3], 4294967264 }
 0x758   :  { %1988 = vsyncpa [#allocation3], 1 }

</bundles_post_ra>
